<compile_context>
chip_gen: v7x
topology: tpu7x:2x2x1
jax: 0.10.0
libtpu: 0.0.40
codegen_flags: <defaults>
</compile_context>

<pallas_src>
import math
import numpy as np
import jax
import jax.numpy as jnp
from jax.experimental import pallas as pl
from jax.experimental.pallas import tpu as pltpu

# ---- model hyper-parameters (small, consistent with the module) ----
B = 2          # batch
S = 8          # sequence length
D = 32         # d_model (layer.size)
H = 4          # attention heads
DK = D // H    # per-head dim
DFF = 64       # feed-forward hidden dim
N_LAYERS = 2   # N in Encoder(layer, N)
EPS = 1e-6

BS = B * S      # fused batch*seq rows processed as one slab
HBS = H * BS    # heads stacked on the sublane axis for fused attention

# matrix-weight slab column layout: [Wq | Wk | Wv | Wo | W1]  -> (L, D, 192)
C_QKV = 0
C_WO = 3 * D
C_W1 = 4 * D
WMAT_COLS = 4 * D + DFF

# vector slab rows (per layer, lane width 96): one (L+1, 8, 96) slab; last "layer" row
# holds the final LayerNorm parameters.
R_QKVB, R_BO, R_B1, R_B2, R_LN1A, R_LN1B, R_LN2A, R_LN2B = range(8)
VEC_W = 3 * D  # 96


def encoder_kernel(x_ref, bias_ref, wmat_ref, w2_ref, vec_ref, o_ref):
    x = x_ref[...]                      # (BS, D)
    bias = bias_ref[...]                # (HBS, HBS) additive attention bias

    def layer_norm(v, a, b):
        mean = jnp.mean(v, axis=-1, keepdims=True)
        # torch.Tensor.std is unbiased (ddof=1); eps is added to std, not var.
        var = jnp.sum((v - mean) ** 2, axis=-1, keepdims=True) * (1.0 / (D - 1))
        return a * (v - mean) / (jnp.sqrt(var) + EPS) + b   # exact divide

    inv_sqrt_dk = 1.0 / math.sqrt(DK)

    def gather_heads(m, base):
        # (BS, lane-head-major) -> (H*BS, DK): heads stacked along sublanes.
        return jnp.concatenate(
            [m[:, base + h * DK: base + (h + 1) * DK] for h in range(H)], axis=0)

    for l in range(N_LAYERS):
        # ---------------- sublayer 0: self-attention (pre-norm residual) ----------------
        xn = layer_norm(x, vec_ref[l, R_LN1A, :D], vec_ref[l, R_LN1B, :D])

        # fused QKV projection: single (BS, D) @ (D, 3D) matmul
        qkv = jnp.dot(xn, wmat_ref[l, :, C_QKV:C_QKV + 3 * D],
                      preferred_element_type=jnp.float32) + vec_ref[l, R_QKVB]  # (BS,3D)

        q_s = gather_heads(qkv, 0)          # (HBS, DK)
        k_s = gather_heads(qkv, D)
        v_s = gather_heads(qkv, 2 * D)

        # all-head scores in ONE matmul; bias kills cross-head, cross-batch and
        # padded-key entries (-1e9 -> exp == 0 after max-subtraction).
        sc = jnp.einsum('qd,kd->qk', q_s, k_s,
                        preferred_element_type=jnp.float32) * inv_sqrt_dk + bias
        sc = sc - jnp.max(sc, axis=-1, keepdims=True)
        p = jnp.exp(sc)
        p = p * pl.reciprocal(jnp.sum(p, axis=-1, keepdims=True), approx=True)

        ctx_s = jnp.dot(p, v_s, preferred_element_type=jnp.float32)      # (HBS, DK)
        # head recombine back to (BS, D) lane-head-major layout (sublane slices + lane concat)
        ctx = jnp.concatenate([ctx_s[h * BS:(h + 1) * BS, :] for h in range(H)], axis=1)
        attn = jnp.dot(ctx, wmat_ref[l, :, C_WO:C_WO + D],
                       preferred_element_type=jnp.float32) + vec_ref[l, R_BO, :D]
        x = x + attn                                     # dropout == identity (eval)

        # ---------------- sublayer 1: position-wise feed-forward ----------------
        xn = layer_norm(x, vec_ref[l, R_LN2A, :D], vec_ref[l, R_LN2B, :D])
        hid = jnp.maximum(
            jnp.dot(xn, wmat_ref[l, :, C_W1:C_W1 + DFF],
                    preferred_element_type=jnp.float32) + vec_ref[l, R_B1, :DFF],
            0.0)
        ff = jnp.dot(hid, w2_ref[l],
                     preferred_element_type=jnp.float32) + vec_ref[l, R_B2, :D]
        x = x + ff

    # ---------------- final LayerNorm ----------------
    o_ref[...] = layer_norm(x, vec_ref[N_LAYERS, 0, :D], vec_ref[N_LAYERS, 1, :D])


def pack_params(params):
    """One-time repack of torch-layout params into kernel slabs (call OUTSIDE jit)."""
    (wq, bq, wk, bk, wv, bv, wo, bo, w1, b1, w2, b2,
     ln1a, ln1b, ln2a, ln2b, fna, fnb) = params

    # matrix slab: [Wq | Wk | Wv | Wo | W1] along lanes -> (L, D, 192), lane-dense
    wmat = jnp.concatenate([wq, wk, wv, wo, w1], axis=-1)

    def pad96(v):
        return jnp.pad(v, ((0, 0), (0, VEC_W - v.shape[-1])))

    qkvb = jnp.concatenate([bq, bk, bv], axis=-1)                         # (L, 96)
    wvec = jnp.stack([qkvb, pad96(bo), pad96(b1), pad96(b2),
                      pad96(ln1a), pad96(ln1b), pad96(ln2a), pad96(ln2b)],
                     axis=1)                                              # (L, 8, 96)
    fin = jnp.zeros((1, 8, VEC_W), jnp.float32)
    fin = fin.at[0, 0, :D].set(fna)
    fin = fin.at[0, 1, :D].set(fnb)
    wvec = jnp.concatenate([wvec, fin], axis=0)                           # (L+1, 8, 96)

    return wmat, w2, wvec                                                 # w2: (L, DFF, D)


def build_attn_bias(mask):
    """(HBS, HBS) additive bias: 0 where (same head & same batch & key kept), else -1e9."""
    idx = jnp.arange(HBS)
    head_id = idx // BS
    row_in = idx % BS
    batch_id = row_in // S
    same_head = head_id[:, None] == head_id[None, :]
    same_batch = batch_id[:, None] == batch_id[None, :]
    key_keep = (mask.reshape(BS) != 0.0)[row_in]          # per-column keep flag
    keep = same_head & same_batch & key_keep[None, :]
    return jnp.where(keep, 0.0, -1e9).astype(jnp.float32)


def encoder_forward(x, mask, wmat, w2, wvec):
    """x: (B, S, D) f32, mask: (B, 1, S) f32 (1 = keep, 0 = mask), pre-packed weights."""
    x2 = x.reshape(BS, D)
    bias = build_attn_bias(mask)

    vmem = pl.BlockSpec(memory_space=pltpu.MemorySpace.VMEM)
    out = pl.pallas_call(
        encoder_kernel,
        out_shape=jax.ShapeDtypeStruct((BS, D), jnp.float32),
        in_specs=[vmem] * 5,
        out_specs=vmem,
    )(x2, bias, wmat, w2, wvec)
    return out.reshape(B, S, D)


# ------------------------- pure-JAX reference (PyTorch semantics) -------------------------
def ref_layer_norm(v, a, b):
    mean = jnp.mean(v, axis=-1, keepdims=True)
    var = jnp.sum((v - mean) ** 2, axis=-1, keepdims=True) / (D - 1)
    return a * (v - mean) / (jnp.sqrt(var) + EPS) + b


def encoder_reference(x, mask, params):
    (wq, bq, wk, bk, wv, bv, wo, bo, w1, b1, w2, b2,
     ln1a, ln1b, ln2a, ln2b, fna, fnb) = params
    out = []
    for bidx in range(B):
        xb = x[bidx]
        mb = mask[bidx]                      # (1, S)
        for l in range(N_LAYERS):
            xn = ref_layer_norm(xb, ln1a[l], ln1b[l])
            q = xn @ wq[l] + bq[l]
            k = xn @ wk[l] + bk[l]
            v = xn @ wv[l] + bv[l]
            heads = []
            for h in range(H):
                sl = slice(h * DK, (h + 1) * DK)
                sc = (q[:, sl] @ k[:, sl].T) / math.sqrt(DK)
                sc = jnp.where(mb == 0.0, -1e9, sc)
                p = jax.nn.softmax(sc, axis=-1)
                heads.append(p @ v[:, sl])
            attn = jnp.concatenate(heads, axis=-1) @ wo[l] + bo[l]
            xb = xb + attn
            xn = ref_layer_norm(xb, ln2a[l], ln2b[l])
            ff = jnp.maximum(xn @ w1[l] + b1[l], 0.0) @ w2[l] + b2[l]
            xb = xb + ff
        out.append(ref_layer_norm(xb, fna, fnb))
    return jnp.stack(out, axis=0)


# ------------------------- deterministic init -------------------------
def make_params(key):
    ks = jax.random.split(key, 12)
    scale = 0.05

    def rnd(k, shape):
        return (scale * jax.random.normal(k, shape)).astype(jnp.float32)

    wq = rnd(ks[0], (N_LAYERS, D, D));   bq = rnd(ks[6], (N_LAYERS, D))
    wk = rnd(ks[1], (N_LAYERS, D, D));   bk = rnd(ks[7], (N_LAYERS, D))
    wv = rnd(ks[2], (N_LAYERS, D, D));   bv = rnd(ks[8], (N_LAYERS, D))
    wo = rnd(ks[3], (N_LAYERS, D, D));   bo = rnd(ks[9], (N_LAYERS, D))
    w1 = rnd(ks[4], (N_LAYERS, D, DFF)); b1 = rnd(ks[10], (N_LAYERS, DFF))
    w2 = rnd(ks[5], (N_LAYERS, DFF, D)); b2 = rnd(ks[11], (N_LAYERS, D))
    ln1a = jnp.ones((N_LAYERS, D), jnp.float32); ln1b = jnp.zeros((N_LAYERS, D), jnp.float32)
    ln2a = jnp.ones((N_LAYERS, D), jnp.float32); ln2b = jnp.zeros((N_LAYERS, D), jnp.float32)
    fna = jnp.ones((D,), jnp.float32);           fnb = jnp.zeros((D,), jnp.float32)
    return [wq, bq, wk, bk, wv, bv, wo, bo, w1, b1, w2, b2,
            ln1a, ln1b, ln2a, ln2b, fna, fnb]


if __name__ == "__main__":
    key = jax.random.PRNGKey(0)
    kx, kp = jax.random.split(key)
    x = jax.random.normal(kx, (B, S, D), dtype=jnp.float32)
    mask = jnp.ones((B, 1, S), dtype=jnp.float32)
    mask = mask.at[1, 0, S - 2:].set(0.0)          # pad the last two keys of batch 1
    params = make_params(kp)

    # one-time weight repacking, hoisted out of the per-call jitted path
    wmat, w2, wvec = pack_params(params)

    run = jax.jit(encoder_forward)
    out = jax.block_until_ready(run(x, mask, wmat, w2, wvec))

    ref = jax.block_until_ready(encoder_reference(x, mask, params))
    np.testing.assert_allclose(np.asarray(out), np.asarray(ref), rtol=5e-3, atol=5e-3)

    print("KERNEL_OK")
</pallas_src>

<mosaic_0001>
module attributes {stable_mosaic.version = 11 : i64} {
  func.func @encoder_kernel(%arg0: memref<16x32xf32, #tpu.memory_space<vmem>>, %arg1: memref<64x64xf32, #tpu.memory_space<vmem>>, %arg2: memref<2x32x192xf32, #tpu.memory_space<vmem>>, %arg3: memref<2x64x32xf32, #tpu.memory_space<vmem>>, %arg4: memref<3x8x96xf32, #tpu.memory_space<vmem>>, %arg5: memref<16x32xf32, #tpu.memory_space<vmem>>) attributes {dimension_semantics = [], scalar_prefetch = 0 : i64, scratch_operands = 0 : i64, tpu.core_type = #tpu.core_type<tc>} {
    %c0 = arith.constant 0 : index
    %c0_0 = arith.constant 0 : index
    %0 = vector.load %arg0[%c0, %c0_0] : memref<16x32xf32, #tpu.memory_space<vmem>>, vector<16x32xf32>
    %c0_1 = arith.constant 0 : index
    %c0_2 = arith.constant 0 : index
    %1 = vector.load %arg1[%c0_1, %c0_2] : memref<64x64xf32, #tpu.memory_space<vmem>>, vector<64x64xf32>
    %c0_3 = arith.constant 0 : index
    %c4 = arith.constant 4 : index
    %c0_4 = arith.constant 0 : index
    %2 = vector.load %arg4[%c0_3, %c4, %c0_4] : memref<3x8x96xf32, #tpu.memory_space<vmem>>, vector<1x1x32xf32>
    %3 = vector.shape_cast %2 : vector<1x1x32xf32> to vector<32xf32>
    %c0_5 = arith.constant 0 : index
    %c5 = arith.constant 5 : index
    %c0_6 = arith.constant 0 : index
    %4 = vector.load %arg4[%c0_5, %c5, %c0_6] : memref<3x8x96xf32, #tpu.memory_space<vmem>>, vector<1x1x32xf32>
    %5 = vector.shape_cast %4 : vector<1x1x32xf32> to vector<32xf32>
    %cst = arith.constant dense<0.000000e+00> : vector<16xf32>
    %6 = vector.multi_reduction <add>, %0, %cst [1] : vector<16x32xf32> to vector<16xf32>
    %7 = vector.shape_cast %6 : vector<16xf32> to vector<16x1xf32>
    %cst_7 = arith.constant 3.200000e+01 : f32
    %8 = vector.broadcast %cst_7 : f32 to vector<16x1xf32>
    %9 = arith.divf %7, %8 : vector<16x1xf32>
    %10 = vector.broadcast %9 : vector<16x1xf32> to vector<16x32xf32>
    %11 = arith.subf %0, %10 : vector<16x32xf32>
    %12 = arith.mulf %11, %11 : vector<16x32xf32>
    %cst_8 = arith.constant dense<0.000000e+00> : vector<16xf32>
    %13 = vector.multi_reduction <add>, %12, %cst_8 [1] : vector<16x32xf32> to vector<16xf32>
    %14 = vector.shape_cast %13 : vector<16xf32> to vector<16x1xf32>
    %cst_9 = arith.constant 0.0322580636 : f32
    %15 = vector.broadcast %cst_9 : f32 to vector<16x1xf32>
    %16 = arith.mulf %14, %15 : vector<16x1xf32>
    %17 = vector.broadcast %9 : vector<16x1xf32> to vector<16x32xf32>
    %18 = arith.subf %0, %17 : vector<16x32xf32>
    %19 = vector.shape_cast %3 : vector<32xf32> to vector<1x32xf32>
    %20 = vector.broadcast %19 : vector<1x32xf32> to vector<16x32xf32>
    %21 = arith.mulf %20, %18 : vector<16x32xf32>
    %22 = math.sqrt %16 : vector<16x1xf32>
    %cst_10 = arith.constant 9.99999997E-7 : f32
    %23 = vector.broadcast %cst_10 : f32 to vector<16x1xf32>
    %24 = arith.addf %22, %23 : vector<16x1xf32>
    %25 = vector.broadcast %24 : vector<16x1xf32> to vector<16x32xf32>
    %26 = arith.divf %21, %25 : vector<16x32xf32>
    %27 = vector.shape_cast %5 : vector<32xf32> to vector<1x32xf32>
    %28 = vector.broadcast %27 : vector<1x32xf32> to vector<16x32xf32>
    %29 = arith.addf %26, %28 : vector<16x32xf32>
    %c0_11 = arith.constant 0 : index
    %c0_12 = arith.constant 0 : index
    %c0_13 = arith.constant 0 : index
    %30 = vector.load %arg2[%c0_11, %c0_12, %c0_13] : memref<2x32x192xf32, #tpu.memory_space<vmem>>, vector<1x32x96xf32>
    %31 = vector.shape_cast %30 : vector<1x32x96xf32> to vector<32x96xf32>
    %cst_14 = arith.constant dense<0.000000e+00> : vector<16x96xf32>
    %32 = tpu.matmul %29, %31, %cst_14 {dimension_numbers = #tpu.dot_dimension_numbers<[1], [0], [0], [1], [0, 0, 1, 1], [], []>} : vector<16x32xf32>, vector<32x96xf32>, vector<16x96xf32> -> vector<16x96xf32>
    %c0_15 = arith.constant 0 : index
    %c0_16 = arith.constant 0 : index
    %c0_17 = arith.constant 0 : index
    %33 = vector.load %arg4[%c0_15, %c0_16, %c0_17] : memref<3x8x96xf32, #tpu.memory_space<vmem>>, vector<1x1x96xf32>
    %34 = vector.shape_cast %33 : vector<1x1x96xf32> to vector<96xf32>
    %35 = vector.shape_cast %34 : vector<96xf32> to vector<1x96xf32>
    %36 = vector.broadcast %35 : vector<1x96xf32> to vector<16x96xf32>
    %37 = arith.addf %32, %36 : vector<16x96xf32>
    %38 = vector.extract_strided_slice %37 {offsets = [0, 0], sizes = [16, 8], strides = [1, 1]} : vector<16x96xf32> to vector<16x8xf32>
    %39 = vector.extract_strided_slice %37 {offsets = [0, 8], sizes = [16, 8], strides = [1, 1]} : vector<16x96xf32> to vector<16x8xf32>
    %40 = vector.extract_strided_slice %37 {offsets = [0, 16], sizes = [16, 8], strides = [1, 1]} : vector<16x96xf32> to vector<16x8xf32>
    %41 = vector.extract_strided_slice %37 {offsets = [0, 24], sizes = [16, 8], strides = [1, 1]} : vector<16x96xf32> to vector<16x8xf32>
    %42 = tpu.concatenate %38, %39, %40, %41 in 0 : vector<16x8xf32>, vector<16x8xf32>, vector<16x8xf32>, vector<16x8xf32> -> vector<64x8xf32>
    %43 = vector.extract_strided_slice %37 {offsets = [0, 32], sizes = [16, 8], strides = [1, 1]} : vector<16x96xf32> to vector<16x8xf32>
    %44 = vector.extract_strided_slice %37 {offsets = [0, 40], sizes = [16, 8], strides = [1, 1]} : vector<16x96xf32> to vector<16x8xf32>
    %45 = vector.extract_strided_slice %37 {offsets = [0, 48], sizes = [16, 8], strides = [1, 1]} : vector<16x96xf32> to vector<16x8xf32>
    %46 = vector.extract_strided_slice %37 {offsets = [0, 56], sizes = [16, 8], strides = [1, 1]} : vector<16x96xf32> to vector<16x8xf32>
    %47 = tpu.concatenate %43, %44, %45, %46 in 0 : vector<16x8xf32>, vector<16x8xf32>, vector<16x8xf32>, vector<16x8xf32> -> vector<64x8xf32>
    %48 = vector.extract_strided_slice %37 {offsets = [0, 64], sizes = [16, 8], strides = [1, 1]} : vector<16x96xf32> to vector<16x8xf32>
    %49 = vector.extract_strided_slice %37 {offsets = [0, 72], sizes = [16, 8], strides = [1, 1]} : vector<16x96xf32> to vector<16x8xf32>
    %50 = vector.extract_strided_slice %37 {offsets = [0, 80], sizes = [16, 8], strides = [1, 1]} : vector<16x96xf32> to vector<16x8xf32>
    %51 = vector.extract_strided_slice %37 {offsets = [0, 88], sizes = [16, 8], strides = [1, 1]} : vector<16x96xf32> to vector<16x8xf32>
    %52 = tpu.concatenate %48, %49, %50, %51 in 0 : vector<16x8xf32>, vector<16x8xf32>, vector<16x8xf32>, vector<16x8xf32> -> vector<64x8xf32>
    "tpu.trace_start"() <{level = 10 : i32, message = "qd,kd->qk"}> : () -> ()
    %cst_18 = arith.constant dense<0.000000e+00> : vector<64x64xf32>
    %53 = tpu.matmul %42, %47, %cst_18 {dimension_numbers = #tpu.dot_dimension_numbers<[1], [1], [0], [0], [0, 0, 1, 0], [], []>} : vector<64x8xf32>, vector<64x8xf32>, vector<64x64xf32> -> vector<64x64xf32>
    "tpu.trace_stop"() : () -> ()
    %cst_19 = arith.constant 0.353553385 : f32
    %54 = vector.broadcast %cst_19 : f32 to vector<64x64xf32>
    %55 = arith.mulf %53, %54 : vector<64x64xf32>
    %56 = arith.addf %55, %1 : vector<64x64xf32>
    %cst_20 = arith.constant dense<0xFF800000> : vector<64xf32>
    %57 = vector.multi_reduction <maximumf>, %56, %cst_20 [1] : vector<64x64xf32> to vector<64xf32>
    %58 = vector.shape_cast %57 : vector<64xf32> to vector<64x1xf32>
    %59 = vector.broadcast %58 : vector<64x1xf32> to vector<64x64xf32>
    %60 = arith.subf %56, %59 : vector<64x64xf32>
    %61 = math.exp %60 : vector<64x64xf32>
    %cst_21 = arith.constant dense<0.000000e+00> : vector<64xf32>
    %62 = vector.multi_reduction <add>, %61, %cst_21 [1] : vector<64x64xf32> to vector<64xf32>
    %63 = vector.shape_cast %62 : vector<64xf32> to vector<64x1xf32>
    %64 = tpu.reciprocal %63 {approx = true} : vector<64x1xf32> -> vector<64x1xf32>
    %65 = vector.broadcast %64 : vector<64x1xf32> to vector<64x64xf32>
    %66 = arith.mulf %61, %65 : vector<64x64xf32>
    %cst_22 = arith.constant dense<0.000000e+00> : vector<64x8xf32>
    %67 = tpu.matmul %66, %52, %cst_22 {dimension_numbers = #tpu.dot_dimension_numbers<[1], [0], [0], [1], [0, 0, 1, 1], [], []>} : vector<64x64xf32>, vector<64x8xf32>, vector<64x8xf32> -> vector<64x8xf32>
    %68 = vector.extract_strided_slice %67 {offsets = [0, 0], sizes = [16, 8], strides = [1, 1]} : vector<64x8xf32> to vector<16x8xf32>
    %69 = vector.extract_strided_slice %67 {offsets = [16, 0], sizes = [16, 8], strides = [1, 1]} : vector<64x8xf32> to vector<16x8xf32>
    %70 = vector.extract_strided_slice %67 {offsets = [32, 0], sizes = [16, 8], strides = [1, 1]} : vector<64x8xf32> to vector<16x8xf32>
    %71 = vector.extract_strided_slice %67 {offsets = [48, 0], sizes = [16, 8], strides = [1, 1]} : vector<64x8xf32> to vector<16x8xf32>
    %72 = tpu.concatenate %68, %69, %70, %71 in 1 : vector<16x8xf32>, vector<16x8xf32>, vector<16x8xf32>, vector<16x8xf32> -> vector<16x32xf32>
    %c0_23 = arith.constant 0 : index
    %c0_24 = arith.constant 0 : index
    %c96 = arith.constant 96 : index
    %73 = vector.load %arg2[%c0_23, %c0_24, %c96] : memref<2x32x192xf32, #tpu.memory_space<vmem>>, vector<1x32x32xf32>
    %74 = vector.shape_cast %73 : vector<1x32x32xf32> to vector<32x32xf32>
    %cst_25 = arith.constant dense<0.000000e+00> : vector<16x32xf32>
    %75 = tpu.matmul %72, %74, %cst_25 {dimension_numbers = #tpu.dot_dimension_numbers<[1], [0], [0], [1], [0, 0, 1, 1], [], []>} : vector<16x32xf32>, vector<32x32xf32>, vector<16x32xf32> -> vector<16x32xf32>
    %c0_26 = arith.constant 0 : index
    %c1 = arith.constant 1 : index
    %c0_27 = arith.constant 0 : index
    %76 = vector.load %arg4[%c0_26, %c1, %c0_27] : memref<3x8x96xf32, #tpu.memory_space<vmem>>, vector<1x1x32xf32>
    %77 = vector.shape_cast %76 : vector<1x1x32xf32> to vector<32xf32>
    %78 = vector.shape_cast %77 : vector<32xf32> to vector<1x32xf32>
    %79 = vector.broadcast %78 : vector<1x32xf32> to vector<16x32xf32>
    %80 = arith.addf %75, %79 : vector<16x32xf32>
    %81 = arith.addf %0, %80 : vector<16x32xf32>
    %c0_28 = arith.constant 0 : index
    %c6 = arith.constant 6 : index
    %c0_29 = arith.constant 0 : index
    %82 = vector.load %arg4[%c0_28, %c6, %c0_29] : memref<3x8x96xf32, #tpu.memory_space<vmem>>, vector<1x1x32xf32>
    %83 = vector.shape_cast %82 : vector<1x1x32xf32> to vector<32xf32>
    %c0_30 = arith.constant 0 : index
    %c7 = arith.constant 7 : index
    %c0_31 = arith.constant 0 : index
    %84 = vector.load %arg4[%c0_30, %c7, %c0_31] : memref<3x8x96xf32, #tpu.memory_space<vmem>>, vector<1x1x32xf32>
    %85 = vector.shape_cast %84 : vector<1x1x32xf32> to vector<32xf32>
    %cst_32 = arith.constant dense<0.000000e+00> : vector<16xf32>
    %86 = vector.multi_reduction <add>, %81, %cst_32 [1] : vector<16x32xf32> to vector<16xf32>
    %87 = vector.shape_cast %86 : vector<16xf32> to vector<16x1xf32>
    %cst_33 = arith.constant 3.200000e+01 : f32
    %88 = vector.broadcast %cst_33 : f32 to vector<16x1xf32>
    %89 = arith.divf %87, %88 : vector<16x1xf32>
    %90 = vector.broadcast %89 : vector<16x1xf32> to vector<16x32xf32>
    %91 = arith.subf %81, %90 : vector<16x32xf32>
    %92 = arith.mulf %91, %91 : vector<16x32xf32>
    %cst_34 = arith.constant dense<0.000000e+00> : vector<16xf32>
    %93 = vector.multi_reduction <add>, %92, %cst_34 [1] : vector<16x32xf32> to vector<16xf32>
    %94 = vector.shape_cast %93 : vector<16xf32> to vector<16x1xf32>
    %cst_35 = arith.constant 0.0322580636 : f32
    %95 = vector.broadcast %cst_35 : f32 to vector<16x1xf32>
    %96 = arith.mulf %94, %95 : vector<16x1xf32>
    %97 = vector.broadcast %89 : vector<16x1xf32> to vector<16x32xf32>
    %98 = arith.subf %81, %97 : vector<16x32xf32>
    %99 = vector.shape_cast %83 : vector<32xf32> to vector<1x32xf32>
    %100 = vector.broadcast %99 : vector<1x32xf32> to vector<16x32xf32>
    %101 = arith.mulf %100, %98 : vector<16x32xf32>
    %102 = math.sqrt %96 : vector<16x1xf32>
    %cst_36 = arith.constant 9.99999997E-7 : f32
    %103 = vector.broadcast %cst_36 : f32 to vector<16x1xf32>
    %104 = arith.addf %102, %103 : vector<16x1xf32>
    %105 = vector.broadcast %104 : vector<16x1xf32> to vector<16x32xf32>
    %106 = arith.divf %101, %105 : vector<16x32xf32>
    %107 = vector.shape_cast %85 : vector<32xf32> to vector<1x32xf32>
    %108 = vector.broadcast %107 : vector<1x32xf32> to vector<16x32xf32>
    %109 = arith.addf %106, %108 : vector<16x32xf32>
    %c0_37 = arith.constant 0 : index
    %c0_38 = arith.constant 0 : index
    %c128 = arith.constant 128 : index
    %110 = vector.load %arg2[%c0_37, %c0_38, %c128] : memref<2x32x192xf32, #tpu.memory_space<vmem>>, vector<1x32x64xf32>
    %111 = vector.shape_cast %110 : vector<1x32x64xf32> to vector<32x64xf32>
    %cst_39 = arith.constant dense<0.000000e+00> : vector<16x64xf32>
    %112 = tpu.matmul %109, %111, %cst_39 {dimension_numbers = #tpu.dot_dimension_numbers<[1], [0], [0], [1], [0, 0, 1, 1], [], []>} : vector<16x32xf32>, vector<32x64xf32>, vector<16x64xf32> -> vector<16x64xf32>
    %c0_40 = arith.constant 0 : index
    %c2 = arith.constant 2 : index
    %c0_41 = arith.constant 0 : index
    %113 = vector.load %arg4[%c0_40, %c2, %c0_41] : memref<3x8x96xf32, #tpu.memory_space<vmem>>, vector<1x1x64xf32>
    %114 = vector.shape_cast %113 : vector<1x1x64xf32> to vector<64xf32>
    %115 = vector.shape_cast %114 : vector<64xf32> to vector<1x64xf32>
    %116 = vector.broadcast %115 : vector<1x64xf32> to vector<16x64xf32>
    %117 = arith.addf %112, %116 : vector<16x64xf32>
    %cst_42 = arith.constant 0.000000e+00 : f32
    %118 = vector.broadcast %cst_42 : f32 to vector<16x64xf32>
    %119 = arith.maximumf %117, %118 : vector<16x64xf32>
    %c0_43 = arith.constant 0 : index
    %c0_44 = arith.constant 0 : index
    %c0_45 = arith.constant 0 : index
    %120 = vector.load %arg3[%c0_43, %c0_44, %c0_45] : memref<2x64x32xf32, #tpu.memory_space<vmem>>, vector<1x64x32xf32>
    %121 = vector.shape_cast %120 : vector<1x64x32xf32> to vector<64x32xf32>
    %cst_46 = arith.constant dense<0.000000e+00> : vector<16x32xf32>
    %122 = tpu.matmul %119, %121, %cst_46 {dimension_numbers = #tpu.dot_dimension_numbers<[1], [0], [0], [1], [0, 0, 1, 1], [], []>} : vector<16x64xf32>, vector<64x32xf32>, vector<16x32xf32> -> vector<16x32xf32>
    %c0_47 = arith.constant 0 : index
    %c3 = arith.constant 3 : index
    %c0_48 = arith.constant 0 : index
    %123 = vector.load %arg4[%c0_47, %c3, %c0_48] : memref<3x8x96xf32, #tpu.memory_space<vmem>>, vector<1x1x32xf32>
    %124 = vector.shape_cast %123 : vector<1x1x32xf32> to vector<32xf32>
    %125 = vector.shape_cast %124 : vector<32xf32> to vector<1x32xf32>
    %126 = vector.broadcast %125 : vector<1x32xf32> to vector<16x32xf32>
    %127 = arith.addf %122, %126 : vector<16x32xf32>
    %128 = arith.addf %81, %127 : vector<16x32xf32>
    %c1_49 = arith.constant 1 : index
    %c4_50 = arith.constant 4 : index
    %c0_51 = arith.constant 0 : index
    %129 = vector.load %arg4[%c1_49, %c4_50, %c0_51] : memref<3x8x96xf32, #tpu.memory_space<vmem>>, vector<1x1x32xf32>
    %130 = vector.shape_cast %129 : vector<1x1x32xf32> to vector<32xf32>
    %c1_52 = arith.constant 1 : index
    %c5_53 = arith.constant 5 : index
    %c0_54 = arith.constant 0 : index
    %131 = vector.load %arg4[%c1_52, %c5_53, %c0_54] : memref<3x8x96xf32, #tpu.memory_space<vmem>>, vector<1x1x32xf32>
    %132 = vector.shape_cast %131 : vector<1x1x32xf32> to vector<32xf32>
    %cst_55 = arith.constant dense<0.000000e+00> : vector<16xf32>
    %133 = vector.multi_reduction <add>, %128, %cst_55 [1] : vector<16x32xf32> to vector<16xf32>
    %134 = vector.shape_cast %133 : vector<16xf32> to vector<16x1xf32>
    %cst_56 = arith.constant 3.200000e+01 : f32
    %135 = vector.broadcast %cst_56 : f32 to vector<16x1xf32>
    %136 = arith.divf %134, %135 : vector<16x1xf32>
    %137 = vector.broadcast %136 : vector<16x1xf32> to vector<16x32xf32>
    %138 = arith.subf %128, %137 : vector<16x32xf32>
    %139 = arith.mulf %138, %138 : vector<16x32xf32>
    %cst_57 = arith.constant dense<0.000000e+00> : vector<16xf32>
    %140 = vector.multi_reduction <add>, %139, %cst_57 [1] : vector<16x32xf32> to vector<16xf32>
    %141 = vector.shape_cast %140 : vector<16xf32> to vector<16x1xf32>
    %cst_58 = arith.constant 0.0322580636 : f32
    %142 = vector.broadcast %cst_58 : f32 to vector<16x1xf32>
    %143 = arith.mulf %141, %142 : vector<16x1xf32>
    %144 = vector.broadcast %136 : vector<16x1xf32> to vector<16x32xf32>
    %145 = arith.subf %128, %144 : vector<16x32xf32>
    %146 = vector.shape_cast %130 : vector<32xf32> to vector<1x32xf32>
    %147 = vector.broadcast %146 : vector<1x32xf32> to vector<16x32xf32>
    %148 = arith.mulf %147, %145 : vector<16x32xf32>
    %149 = math.sqrt %143 : vector<16x1xf32>
    %cst_59 = arith.constant 9.99999997E-7 : f32
    %150 = vector.broadcast %cst_59 : f32 to vector<16x1xf32>
    %151 = arith.addf %149, %150 : vector<16x1xf32>
    %152 = vector.broadcast %151 : vector<16x1xf32> to vector<16x32xf32>
    %153 = arith.divf %148, %152 : vector<16x32xf32>
    %154 = vector.shape_cast %132 : vector<32xf32> to vector<1x32xf32>
    %155 = vector.broadcast %154 : vector<1x32xf32> to vector<16x32xf32>
    %156 = arith.addf %153, %155 : vector<16x32xf32>
    %c1_60 = arith.constant 1 : index
    %c0_61 = arith.constant 0 : index
    %c0_62 = arith.constant 0 : index
    %157 = vector.load %arg2[%c1_60, %c0_61, %c0_62] : memref<2x32x192xf32, #tpu.memory_space<vmem>>, vector<1x32x96xf32>
    %158 = vector.shape_cast %157 : vector<1x32x96xf32> to vector<32x96xf32>
    %cst_63 = arith.constant dense<0.000000e+00> : vector<16x96xf32>
    %159 = tpu.matmul %156, %158, %cst_63 {dimension_numbers = #tpu.dot_dimension_numbers<[1], [0], [0], [1], [0, 0, 1, 1], [], []>} : vector<16x32xf32>, vector<32x96xf32>, vector<16x96xf32> -> vector<16x96xf32>
    %c1_64 = arith.constant 1 : index
    %c0_65 = arith.constant 0 : index
    %c0_66 = arith.constant 0 : index
    %160 = vector.load %arg4[%c1_64, %c0_65, %c0_66] : memref<3x8x96xf32, #tpu.memory_space<vmem>>, vector<1x1x96xf32>
    %161 = vector.shape_cast %160 : vector<1x1x96xf32> to vector<96xf32>
    %162 = vector.shape_cast %161 : vector<96xf32> to vector<1x96xf32>
    %163 = vector.broadcast %162 : vector<1x96xf32> to vector<16x96xf32>
    %164 = arith.addf %159, %163 : vector<16x96xf32>
    %165 = vector.extract_strided_slice %164 {offsets = [0, 0], sizes = [16, 8], strides = [1, 1]} : vector<16x96xf32> to vector<16x8xf32>
    %166 = vector.extract_strided_slice %164 {offsets = [0, 8], sizes = [16, 8], strides = [1, 1]} : vector<16x96xf32> to vector<16x8xf32>
    %167 = vector.extract_strided_slice %164 {offsets = [0, 16], sizes = [16, 8], strides = [1, 1]} : vector<16x96xf32> to vector<16x8xf32>
    %168 = vector.extract_strided_slice %164 {offsets = [0, 24], sizes = [16, 8], strides = [1, 1]} : vector<16x96xf32> to vector<16x8xf32>
    %169 = tpu.concatenate %165, %166, %167, %168 in 0 : vector<16x8xf32>, vector<16x8xf32>, vector<16x8xf32>, vector<16x8xf32> -> vector<64x8xf32>
    %170 = vector.extract_strided_slice %164 {offsets = [0, 32], sizes = [16, 8], strides = [1, 1]} : vector<16x96xf32> to vector<16x8xf32>
    %171 = vector.extract_strided_slice %164 {offsets = [0, 40], sizes = [16, 8], strides = [1, 1]} : vector<16x96xf32> to vector<16x8xf32>
    %172 = vector.extract_strided_slice %164 {offsets = [0, 48], sizes = [16, 8], strides = [1, 1]} : vector<16x96xf32> to vector<16x8xf32>
    %173 = vector.extract_strided_slice %164 {offsets = [0, 56], sizes = [16, 8], strides = [1, 1]} : vector<16x96xf32> to vector<16x8xf32>
    %174 = tpu.concatenate %170, %171, %172, %173 in 0 : vector<16x8xf32>, vector<16x8xf32>, vector<16x8xf32>, vector<16x8xf32> -> vector<64x8xf32>
    %175 = vector.extract_strided_slice %164 {offsets = [0, 64], sizes = [16, 8], strides = [1, 1]} : vector<16x96xf32> to vector<16x8xf32>
    %176 = vector.extract_strided_slice %164 {offsets = [0, 72], sizes = [16, 8], strides = [1, 1]} : vector<16x96xf32> to vector<16x8xf32>
    %177 = vector.extract_strided_slice %164 {offsets = [0, 80], sizes = [16, 8], strides = [1, 1]} : vector<16x96xf32> to vector<16x8xf32>
    %178 = vector.extract_strided_slice %164 {offsets = [0, 88], sizes = [16, 8], strides = [1, 1]} : vector<16x96xf32> to vector<16x8xf32>
    %179 = tpu.concatenate %175, %176, %177, %178 in 0 : vector<16x8xf32>, vector<16x8xf32>, vector<16x8xf32>, vector<16x8xf32> -> vector<64x8xf32>
    "tpu.trace_start"() <{level = 10 : i32, message = "qd,kd->qk"}> : () -> ()
    %cst_67 = arith.constant dense<0.000000e+00> : vector<64x64xf32>
    %180 = tpu.matmul %169, %174, %cst_67 {dimension_numbers = #tpu.dot_dimension_numbers<[1], [1], [0], [0], [0, 0, 1, 0], [], []>} : vector<64x8xf32>, vector<64x8xf32>, vector<64x64xf32> -> vector<64x64xf32>
    "tpu.trace_stop"() : () -> ()
    %cst_68 = arith.constant 0.353553385 : f32
    %181 = vector.broadcast %cst_68 : f32 to vector<64x64xf32>
    %182 = arith.mulf %180, %181 : vector<64x64xf32>
    %183 = arith.addf %182, %1 : vector<64x64xf32>
    %cst_69 = arith.constant dense<0xFF800000> : vector<64xf32>
    %184 = vector.multi_reduction <maximumf>, %183, %cst_69 [1] : vector<64x64xf32> to vector<64xf32>
    %185 = vector.shape_cast %184 : vector<64xf32> to vector<64x1xf32>
    %186 = vector.broadcast %185 : vector<64x1xf32> to vector<64x64xf32>
    %187 = arith.subf %183, %186 : vector<64x64xf32>
    %188 = math.exp %187 : vector<64x64xf32>
    %cst_70 = arith.constant dense<0.000000e+00> : vector<64xf32>
    %189 = vector.multi_reduction <add>, %188, %cst_70 [1] : vector<64x64xf32> to vector<64xf32>
    %190 = vector.shape_cast %189 : vector<64xf32> to vector<64x1xf32>
    %191 = tpu.reciprocal %190 {approx = true} : vector<64x1xf32> -> vector<64x1xf32>
    %192 = vector.broadcast %191 : vector<64x1xf32> to vector<64x64xf32>
    %193 = arith.mulf %188, %192 : vector<64x64xf32>
    %cst_71 = arith.constant dense<0.000000e+00> : vector<64x8xf32>
    %194 = tpu.matmul %193, %179, %cst_71 {dimension_numbers = #tpu.dot_dimension_numbers<[1], [0], [0], [1], [0, 0, 1, 1], [], []>} : vector<64x64xf32>, vector<64x8xf32>, vector<64x8xf32> -> vector<64x8xf32>
    %195 = vector.extract_strided_slice %194 {offsets = [0, 0], sizes = [16, 8], strides = [1, 1]} : vector<64x8xf32> to vector<16x8xf32>
    %196 = vector.extract_strided_slice %194 {offsets = [16, 0], sizes = [16, 8], strides = [1, 1]} : vector<64x8xf32> to vector<16x8xf32>
    %197 = vector.extract_strided_slice %194 {offsets = [32, 0], sizes = [16, 8], strides = [1, 1]} : vector<64x8xf32> to vector<16x8xf32>
    %198 = vector.extract_strided_slice %194 {offsets = [48, 0], sizes = [16, 8], strides = [1, 1]} : vector<64x8xf32> to vector<16x8xf32>
    %199 = tpu.concatenate %195, %196, %197, %198 in 1 : vector<16x8xf32>, vector<16x8xf32>, vector<16x8xf32>, vector<16x8xf32> -> vector<16x32xf32>
    %c1_72 = arith.constant 1 : index
    %c0_73 = arith.constant 0 : index
    %c96_74 = arith.constant 96 : index
    %200 = vector.load %arg2[%c1_72, %c0_73, %c96_74] : memref<2x32x192xf32, #tpu.memory_space<vmem>>, vector<1x32x32xf32>
    %201 = vector.shape_cast %200 : vector<1x32x32xf32> to vector<32x32xf32>
    %cst_75 = arith.constant dense<0.000000e+00> : vector<16x32xf32>
    %202 = tpu.matmul %199, %201, %cst_75 {dimension_numbers = #tpu.dot_dimension_numbers<[1], [0], [0], [1], [0, 0, 1, 1], [], []>} : vector<16x32xf32>, vector<32x32xf32>, vector<16x32xf32> -> vector<16x32xf32>
    %c1_76 = arith.constant 1 : index
    %c1_77 = arith.constant 1 : index
    %c0_78 = arith.constant 0 : index
    %203 = vector.load %arg4[%c1_76, %c1_77, %c0_78] : memref<3x8x96xf32, #tpu.memory_space<vmem>>, vector<1x1x32xf32>
    %204 = vector.shape_cast %203 : vector<1x1x32xf32> to vector<32xf32>
    %205 = vector.shape_cast %204 : vector<32xf32> to vector<1x32xf32>
    %206 = vector.broadcast %205 : vector<1x32xf32> to vector<16x32xf32>
    %207 = arith.addf %202, %206 : vector<16x32xf32>
    %208 = arith.addf %128, %207 : vector<16x32xf32>
    %c1_79 = arith.constant 1 : index
    %c6_80 = arith.constant 6 : index
    %c0_81 = arith.constant 0 : index
    %209 = vector.load %arg4[%c1_79, %c6_80, %c0_81] : memref<3x8x96xf32, #tpu.memory_space<vmem>>, vector<1x1x32xf32>
    %210 = vector.shape_cast %209 : vector<1x1x32xf32> to vector<32xf32>
    %c1_82 = arith.constant 1 : index
    %c7_83 = arith.constant 7 : index
    %c0_84 = arith.constant 0 : index
    %211 = vector.load %arg4[%c1_82, %c7_83, %c0_84] : memref<3x8x96xf32, #tpu.memory_space<vmem>>, vector<1x1x32xf32>
    %212 = vector.shape_cast %211 : vector<1x1x32xf32> to vector<32xf32>
    %cst_85 = arith.constant dense<0.000000e+00> : vector<16xf32>
    %213 = vector.multi_reduction <add>, %208, %cst_85 [1] : vector<16x32xf32> to vector<16xf32>
    %214 = vector.shape_cast %213 : vector<16xf32> to vector<16x1xf32>
    %cst_86 = arith.constant 3.200000e+01 : f32
    %215 = vector.broadcast %cst_86 : f32 to vector<16x1xf32>
    %216 = arith.divf %214, %215 : vector<16x1xf32>
    %217 = vector.broadcast %216 : vector<16x1xf32> to vector<16x32xf32>
    %218 = arith.subf %208, %217 : vector<16x32xf32>
    %219 = arith.mulf %218, %218 : vector<16x32xf32>
    %cst_87 = arith.constant dense<0.000000e+00> : vector<16xf32>
    %220 = vector.multi_reduction <add>, %219, %cst_87 [1] : vector<16x32xf32> to vector<16xf32>
    %221 = vector.shape_cast %220 : vector<16xf32> to vector<16x1xf32>
    %cst_88 = arith.constant 0.0322580636 : f32
    %222 = vector.broadcast %cst_88 : f32 to vector<16x1xf32>
    %223 = arith.mulf %221, %222 : vector<16x1xf32>
    %224 = vector.broadcast %216 : vector<16x1xf32> to vector<16x32xf32>
    %225 = arith.subf %208, %224 : vector<16x32xf32>
    %226 = vector.shape_cast %210 : vector<32xf32> to vector<1x32xf32>
    %227 = vector.broadcast %226 : vector<1x32xf32> to vector<16x32xf32>
    %228 = arith.mulf %227, %225 : vector<16x32xf32>
    %229 = math.sqrt %223 : vector<16x1xf32>
    %cst_89 = arith.constant 9.99999997E-7 : f32
    %230 = vector.broadcast %cst_89 : f32 to vector<16x1xf32>
    %231 = arith.addf %229, %230 : vector<16x1xf32>
    %232 = vector.broadcast %231 : vector<16x1xf32> to vector<16x32xf32>
    %233 = arith.divf %228, %232 : vector<16x32xf32>
    %234 = vector.shape_cast %212 : vector<32xf32> to vector<1x32xf32>
    %235 = vector.broadcast %234 : vector<1x32xf32> to vector<16x32xf32>
    %236 = arith.addf %233, %235 : vector<16x32xf32>
    %c1_90 = arith.constant 1 : index
    %c0_91 = arith.constant 0 : index
    %c128_92 = arith.constant 128 : index
    %237 = vector.load %arg2[%c1_90, %c0_91, %c128_92] : memref<2x32x192xf32, #tpu.memory_space<vmem>>, vector<1x32x64xf32>
    %238 = vector.shape_cast %237 : vector<1x32x64xf32> to vector<32x64xf32>
    %cst_93 = arith.constant dense<0.000000e+00> : vector<16x64xf32>
    %239 = tpu.matmul %236, %238, %cst_93 {dimension_numbers = #tpu.dot_dimension_numbers<[1], [0], [0], [1], [0, 0, 1, 1], [], []>} : vector<16x32xf32>, vector<32x64xf32>, vector<16x64xf32> -> vector<16x64xf32>
    %c1_94 = arith.constant 1 : index
    %c2_95 = arith.constant 2 : index
    %c0_96 = arith.constant 0 : index
    %240 = vector.load %arg4[%c1_94, %c2_95, %c0_96] : memref<3x8x96xf32, #tpu.memory_space<vmem>>, vector<1x1x64xf32>
    %241 = vector.shape_cast %240 : vector<1x1x64xf32> to vector<64xf32>
    %242 = vector.shape_cast %241 : vector<64xf32> to vector<1x64xf32>
    %243 = vector.broadcast %242 : vector<1x64xf32> to vector<16x64xf32>
    %244 = arith.addf %239, %243 : vector<16x64xf32>
    %cst_97 = arith.constant 0.000000e+00 : f32
    %245 = vector.broadcast %cst_97 : f32 to vector<16x64xf32>
    %246 = arith.maximumf %244, %245 : vector<16x64xf32>
    %c1_98 = arith.constant 1 : index
    %c0_99 = arith.constant 0 : index
    %c0_100 = arith.constant 0 : index
    %247 = vector.load %arg3[%c1_98, %c0_99, %c0_100] : memref<2x64x32xf32, #tpu.memory_space<vmem>>, vector<1x64x32xf32>
    %248 = vector.shape_cast %247 : vector<1x64x32xf32> to vector<64x32xf32>
    %cst_101 = arith.constant dense<0.000000e+00> : vector<16x32xf32>
    %249 = tpu.matmul %246, %248, %cst_101 {dimension_numbers = #tpu.dot_dimension_numbers<[1], [0], [0], [1], [0, 0, 1, 1], [], []>} : vector<16x64xf32>, vector<64x32xf32>, vector<16x32xf32> -> vector<16x32xf32>
    %c1_102 = arith.constant 1 : index
    %c3_103 = arith.constant 3 : index
    %c0_104 = arith.constant 0 : index
    %250 = vector.load %arg4[%c1_102, %c3_103, %c0_104] : memref<3x8x96xf32, #tpu.memory_space<vmem>>, vector<1x1x32xf32>
    %251 = vector.shape_cast %250 : vector<1x1x32xf32> to vector<32xf32>
    %252 = vector.shape_cast %251 : vector<32xf32> to vector<1x32xf32>
    %253 = vector.broadcast %252 : vector<1x32xf32> to vector<16x32xf32>
    %254 = arith.addf %249, %253 : vector<16x32xf32>
    %255 = arith.addf %208, %254 : vector<16x32xf32>
    %c2_105 = arith.constant 2 : index
    %c0_106 = arith.constant 0 : index
    %c0_107 = arith.constant 0 : index
    %256 = vector.load %arg4[%c2_105, %c0_106, %c0_107] : memref<3x8x96xf32, #tpu.memory_space<vmem>>, vector<1x1x32xf32>
    %257 = vector.shape_cast %256 : vector<1x1x32xf32> to vector<32xf32>
    %c2_108 = arith.constant 2 : index
    %c1_109 = arith.constant 1 : index
    %c0_110 = arith.constant 0 : index
    %258 = vector.load %arg4[%c2_108, %c1_109, %c0_110] : memref<3x8x96xf32, #tpu.memory_space<vmem>>, vector<1x1x32xf32>
    %259 = vector.shape_cast %258 : vector<1x1x32xf32> to vector<32xf32>
    %cst_111 = arith.constant dense<0.000000e+00> : vector<16xf32>
    %260 = vector.multi_reduction <add>, %255, %cst_111 [1] : vector<16x32xf32> to vector<16xf32>
    %261 = vector.shape_cast %260 : vector<16xf32> to vector<16x1xf32>
    %cst_112 = arith.constant 3.200000e+01 : f32
    %262 = vector.broadcast %cst_112 : f32 to vector<16x1xf32>
    %263 = arith.divf %261, %262 : vector<16x1xf32>
    %264 = vector.broadcast %263 : vector<16x1xf32> to vector<16x32xf32>
    %265 = arith.subf %255, %264 : vector<16x32xf32>
    %266 = arith.mulf %265, %265 : vector<16x32xf32>
    %cst_113 = arith.constant dense<0.000000e+00> : vector<16xf32>
    %267 = vector.multi_reduction <add>, %266, %cst_113 [1] : vector<16x32xf32> to vector<16xf32>
    %268 = vector.shape_cast %267 : vector<16xf32> to vector<16x1xf32>
    %cst_114 = arith.constant 0.0322580636 : f32
    %269 = vector.broadcast %cst_114 : f32 to vector<16x1xf32>
    %270 = arith.mulf %268, %269 : vector<16x1xf32>
    %271 = vector.broadcast %263 : vector<16x1xf32> to vector<16x32xf32>
    %272 = arith.subf %255, %271 : vector<16x32xf32>
    %273 = vector.shape_cast %257 : vector<32xf32> to vector<1x32xf32>
    %274 = vector.broadcast %273 : vector<1x32xf32> to vector<16x32xf32>
    %275 = arith.mulf %274, %272 : vector<16x32xf32>
    %276 = math.sqrt %270 : vector<16x1xf32>
    %cst_115 = arith.constant 9.99999997E-7 : f32
    %277 = vector.broadcast %cst_115 : f32 to vector<16x1xf32>
    %278 = arith.addf %276, %277 : vector<16x1xf32>
    %279 = vector.broadcast %278 : vector<16x1xf32> to vector<16x32xf32>
    %280 = arith.divf %275, %279 : vector<16x32xf32>
    %281 = vector.shape_cast %259 : vector<32xf32> to vector<1x32xf32>
    %282 = vector.broadcast %281 : vector<1x32xf32> to vector<16x32xf32>
    %283 = arith.addf %280, %282 : vector<16x32xf32>
    %c0_116 = arith.constant 0 : index
    %c0_117 = arith.constant 0 : index
    %284 = vector.load %arg5[%c0_116, %c0_117] : memref<16x32xf32, #tpu.memory_space<vmem>>, vector<16x32xf32>
    tpu.vector_store %arg5[%c0_116, %c0_117], %283 {strides = array<i32>} : memref<16x32xf32, #tpu.memory_space<vmem>>, vector<16x32xf32>,
    return
  }
}

</mosaic_0001>

<bundles_post_ra>
// kernel: encoder_forward.1
= control target key start
LH: loop header
LB: loop body
LE: loop exit
PB: predicated region body
PF: predicated region fallthrough
CT: control target
= control target key end

     0   :  { %vm33_vm0 = vcmask 261120   ;;  %s3454_s0 = inlined_call_operand.vmem [shape: f32[16,32], index: 0, kind: input, shape index: {}]   ;;  %s3455_s1 = inlined_call_operand.vmem [shape: f32[64,64], index: 1, kind: input, shape index: {}]   ;;  %s3456_s2 = inlined_call_operand.vmem [shape: f32[2,32,192], index: 2, kind: input, shape index: {}]   ;;  %s3457_s3 = inlined_call_operand.vmem [shape: f32[2,64,32], index: 3, kind: input, shape index: {}]   ;;  %s3458_s4 = inlined_call_operand.vmem [shape: f32[3,8,96], index: 4, kind: input, shape index: {}]   ;;  %s3459_s5 = inlined_call_operand.hbm [shape: f32[16,32], index: 5, kind: output, shape index: {}]  }
   0x1   :  { %v2900_v0 = vld [vmem:[%s3454_s0] sm:$0xff]  ;;  %v2905_v1 = vld [vmem:[%s3454_s0 + $0x8] sm:$0xff] }
   0x2   :  { %v34_v2 = vsel %vm33_vm0, %v2900_v0, 0.0 }
   0x3   :  { %10 = vsyncpa [#allocation3], 0  ;;  %35 = vadd.xlane.f32.xlu0 %v34_v2  ;;  %v37_v3 = vsel %vm33_vm0, %v2905_v1, 0.0  ;;  %v2918_v14 = vld [vmem:[%s3456_s2] sm:$0xff]  ;;  %v2923_v15 = vld [vmem:[%s3456_s2 + $0x10] sm:$0xff]  ;;  %vm207_vm5 = vcmask 64512  }
   0x4   :  { %v2928_v16 = vld [vmem:[%s3456_s2 + $0x20] sm:$0xff]  ;;  %v2457_v17 = vpack.c.bf16 %v2923_v15, %v2918_v14  ;;  %v2935_v18 = vld [vmem:[%s3456_s2 + $0x30] sm:$0xff]  ;;  %s2856_s10 = smov 120   ;;  %s2857_s11 = smov 112   ;;  %vm2971_vm6 = vmpackc.low %vm207_vm5, %vm207_vm5  ;;  %vm361_vm7 = vcmask 523264   ;;  %vm629_vm8 = vcmask 130048  }
   0x5   :  { %v2461_v19 = vpack.c.bf16 %v2935_v18, %v2928_v16  ;;  %v2009_v36 = vld [vmem:[%s3458_s4 + $0x4] ss:$0 sm:$0xff]  ;;  %v2010_v39 = vld [vmem:[%s3458_s4 + $0x5] ss:$0 sm:$0xff]  ;;  %v2011_v46 = vld [vmem:[%s3458_s4] ss:$0 sm:$0xff] }
   0x6   :  { %2458 = vmatprep.subr.bf16.mxu0 %v2457_v17  ;;  %s2858_s12 = smov 104   ;;  %s2859_s13 = smov 96   ;;  %vm632_vm9 = vcmask 195584  }
   0x7   :  { %38 = vadd.xlane.f32.xlu0 %v37_v3  ;;  %2460 = vmatpush3.bf16.msra.mxu0 %v2457_v17  ;;  %s2860_s29 = smov 64   ;;  %s2862_s30 = smov 8  }
   0x8   :  { %2462 = vmatprep.subr.bf16.mxu0 %v2461_v19  ;;  %s2863_s6 = smov 16   ;;  %s2864_s7 = smov 24  }
   0x9   :  { %s2865_s25 = smov [#allocation2]  }
   0xa   :  { %s1998_s26 = sshll.u32 %s2865_s25, 4  ;;  %s1999_s26 = int_to_ptr.vmem [resolvable:$true] %s1998_s26 }
   0xb   :  { %2464 = vmatpush3.bf16.msra.mxu0 %v2461_v19  ;;  %s2832_s27 = scalar_lea.vmem %s1999_s26, 256  ;;  %p2837_p1 = scmp.lt.s32.totalorder %s1999_s26, %s1999_s26 }
   0xc   :  { %p2833_p0 = scmp.ne.s32.totalorder %s1999_s26, %s2832_s27  ;;  %p2838_p2 = scmp.lt.s32.totalorder %s2832_s27, %s2832_s27 }
   0xe   :  { %p2839_p3 = por %p2838_p2, %p2837_p1 }
  0x10   :  { %p2840_p4 = pnand %p2839_p3, %p2833_p0 }
  0x90   :  { %v36_v4 = vpop.xlane.xlu0 %35 }
  0x91   :  { %v41_v5 = vmul.f32 0.03125, %v36_v4 }
  0x93   :  { %v43_v6 = vsub.f32 %v2900_v0, %v41_v5 }
  0x94   :  { %v39_v7 = vpop.xlane.xlu0 %38 }
  0x95   :  { %v42_v8 = vmul.f32 0.03125, %v39_v7  ;;  %v45_v9 = vmul.f32 %v43_v6, %v43_v6  ;;  %v59_v37 = vmul.f32 %v2009_v36, %v43_v6 }
  0x97   :  { %v44_v10 = vsub.f32 %v2905_v1, %v42_v8  ;;  %v47_v11 = vsel %vm33_vm0, %v45_v9, 0.0 }
  0x98   :  { %48 = vadd.xlane.f32.xlu1 %v47_v11 }
  0x99   :  { %v46_v12 = vmul.f32 %v44_v10, %v44_v10  ;;  %v60_v41 = vmul.f32 %v2009_v36, %v44_v10  ;;  %v3025_v36 = vld [vmem:[%s3455_s1 + $0x10] sm:$0xff] }
  0x9b   :  { %v50_v13 = vsel %vm33_vm0, %v46_v12, 0.0 }
  0x9c   :  { %51 = vadd.xlane.f32.xlu1 %v50_v13 }
 0x125   :  { %v49_v20 = vpop.xlane.xlu1 %48 }
 0x126   :  { %v53_v21 = vmul.f32 0.032258064, %v49_v20 }
 0x128   :  { %2728 = vrsqrt.f32 %v53_v21  ;;  %vm63_vm1 = vcmp.eq.f32.partialorder %v53_v21, inf  ;;  %v66_v26 = vand.u32 2147483648, %v53_v21  ;;  %vm65_vm2 = vcmp.eq.f32.partialorder %v53_v21, 0.0 }
 0x129   :  { %v52_v22 = vpop.xlane.xlu1 %51 }
 0x12a   :  { %v54_v23 = vmul.f32 0.032258064, %v52_v22 }
 0x12c   :  { %2730 = vrsqrt.f32 %v54_v23  ;;  %vm70_vm3 = vcmp.eq.f32.partialorder %v54_v23, inf  ;;  %v73_v32 = vand.u32 2147483648, %v54_v23  ;;  %vm72_vm4 = vcmp.eq.f32.partialorder %v54_v23, 0.0 }
 0x132   :  { %v2729_v24 = vpop.eup %2728 }
 0x133   :  { %v62_v25 = vmul.f32 %v2729_v24, %v53_v21  ;;  %v3010_v24 = vld [vmem:[%s3455_s1] sm:$0xff] }
 0x135   :  { %v64_v27 = vsel %vm63_vm1, %v53_v21, %v62_v25  ;;  %v3005_v21 = vld [vmem:[%s3455_s1 + $0x8] sm:$0xff] }
 0x136   :  { %v2731_v28 = vpop.eup %2730  ;;  %v67_v29 = vsel %vm65_vm2, %v66_v26, %v64_v27 }
 0x137   :  { %v69_v30 = vmul.f32 %v2731_v28, %v54_v23  ;;  %v75_v31 = vadd.f32 1e-06, %v67_v29  ;;  %v3017_v29 = vld [vmem:[%s3455_s1 + $0x18] sm:$0xff] }
 0x139   :  { %v71_v33 = vsel %vm70_vm3, %v54_v23, %v69_v30  ;;  %2732 = vrcp.f32 %v75_v31 }
 0x13a   :  { %v74_v34 = vsel %vm72_vm4, %v73_v32, %v71_v33 }
 0x13b   :  { %v76_v35 = vadd.f32 1e-06, %v74_v34 }
 0x13d   :  { %2734 = vrcp.f32 %v76_v35 }
 0x143   :  { %v2733_v38 = vpop.eup %2732 }
 0x144   :  { %v78_v40 = vmul.f32 %v2733_v38, %v59_v37  ;;  %v3030_v38 = vld [vmem:[%s3455_s1 + $0x28] sm:$0xff] }
 0x146   :  { %v85_v42 = vadd.f32 %v2010_v39, %v78_v40 }
 0x147   :  { %v2735_v43 = vpop.eup %2734 }
 0x148   :  { %v80_v44 = vmul.f32 %v2735_v43, %v60_v41  ;;  %2249 = vmatprep.mubr.msk.f32.mxu0 %vm33_vm0, %v85_v42 }
 0x14a   :  { %v86_v45 = vadd.f32 %v2010_v39, %v80_v44 }
 0x14c   :  { %2250 = vmatmul.mubr.msk.f32.vlgmr.msra.gmra.mrb[0].mxu0 %vm33_vm0, %v86_v45  ;;  %v3038_v45 = vld [vmem:[%s3455_s1 + $0x20] sm:$0xff] }
 0x21f   :  { %v2251_v47 = vpop.f32.mrb[0].mxu0 }
 0x220   :  { %v174_v48 = vadd.f32 %v2251_v47, %v2011_v46  ;;  %v168_v49 = vpop.f32.mrb[1].mxu0  ;;  %v3043_v47 = vld [vmem:[%s3455_s1 + $0x38] sm:$0xff] }
 0x221   :  { %v169_v50 = vadd.f32 %v2011_v46, %v168_v49 }
 0x222   :  { %181 = vrot.lane.b32.xlu1 %v174_v48, %s2856_s10 }
 0x223   :  { %179 = vrot.lane.b32.xlu0 %v169_v50, %s2856_s10  ;;  %2268 = vmatprep.mubr.msk.f32.mxu1 %vm207_vm5, %v169_v50  ;;  %v2955_v51 = vpack.i.bf16 %v174_v48, %v169_v50 }
 0x226   :  { %183 = vrot.lane.b32.xlu1 %v169_v50, %s2857_s11 }
 0x227   :  { %187 = vrot.lane.b32.xlu0 %v169_v50, %s2858_s12 }
 0x22a   :  { %185 = vrot.lane.b32.xlu1 %v174_v48, %s2857_s11 }
 0x22b   :  { %2629 = vrot.lane.b32.xlu0 %v2955_v51, %s2859_s13 }
 0x22e   :  { %189 = vrot.lane.b32.xlu1 %v174_v48, %s2858_s12 }
 0x294   :  { %v182_v52 = vpop.permute.xlu1 %181 }
 0x295   :  { %v180_v53 = vpop.permute.xlu0 %179 }
 0x296   :  { %v2961_v54 = vpack.i.bf16 %v182_v52, %v180_v53 }
 0x298   :  { %v184_v55 = vpop.permute.xlu1 %183  ;;  %2634 = vrot.lane.b32.xlu1 %v2961_v54, %s2859_s13 }
 0x299   :  { %v188_v56 = vpop.permute.xlu0 %187 }
 0x29c   :  { %v186_v57 = vpop.permute.xlu1 %185 }
 0x29d   :  { %v2965_v58 = vpack.i.bf16 %v186_v57, %v184_v55  ;;  %v2630_v59 = vpop.permute.xlu0 %2629 }
 0x29e   :  { %v2632_v60 = vunpack.i.h.bf16 %v2630_v59  ;;  %v2631_v61 = vunpack.i.l.bf16 %v2630_v59 }
 0x29f   :  { %2639 = vrot.lane.b32.xlu0 %v2965_v58, %s2859_s13 }
 0x2a0   :  { %v190_v63 = vpop.permute.xlu1 %189  ;;  %v2465_v2 = vpack.c.bf16 %v2632_v60, %v2631_v61 }
 0x2a1   :  { %v2975_v3 = vpack.i.bf16 %v190_v63, %v188_v56 }
 0x2a2   :  { %2467 = vmatprep.subr.msk.bf16.mxu1 %vm2971_vm6, %v2465_v2 }
 0x2a3   :  { %2644 = vrot.lane.b32.xlu1 %v2975_v3, %s2859_s13  ;;  %2470 = vmatpush3.bf16.xpose.msk.msra.mxu1 %vm2971_vm6, %v2465_v2 }
 0x30a   :  { %v2635_v4 = vpop.permute.xlu1 %2634 }
 0x30b   :  { %v2637_v5 = vunpack.i.h.bf16 %v2635_v4  ;;  %v2636_v6 = vunpack.i.l.bf16 %v2635_v4 }
 0x30d   :  { %v2471_v7 = vpack.c.bf16 %v2637_v5, %v2636_v6 }
 0x30f   :  { %2473 = vmatprep.subr.msk.bf16.mxu1 %vm2971_vm6, %v2471_v7 }
 0x310   :  { %2476 = vmatpush3.bf16.xpose.msk.msra.mxu1 %vm2971_vm6, %v2471_v7 }
 0x311   :  { %v2640_v8 = vpop.permute.xlu0 %2639 }
 0x312   :  { %v2642_v9 = vunpack.i.h.bf16 %v2640_v8  ;;  %v2641_v10 = vunpack.i.l.bf16 %v2640_v8 }
 0x314   :  { %v2477_v11 = vpack.c.bf16 %v2642_v9, %v2641_v10 }
 0x315   :  { %v2645_v12 = vpop.permute.xlu1 %2644 }
 0x316   :  { %v2647_v13 = vunpack.i.h.bf16 %v2645_v12  ;;  %v2646_v17 = vunpack.i.l.bf16 %v2645_v12  ;;  %2479 = vmatprep.subr.msk.bf16.mxu1 %vm2971_vm6, %v2477_v11 }
 0x318   :  { %v2483_v19 = vpack.c.bf16 %v2647_v13, %v2646_v17  ;;  %2482 = vmatpush3.bf16.xpose.msk.msra.mxu1 %vm2971_vm6, %v2477_v11 }
 0x31a   :  { %2485 = vmatprep.subr.msk.bf16.mxu1 %vm2971_vm6, %v2483_v19 }
 0x320   :  { %2488 = vmatpush3.bf16.xpose.msk.msra.mxu1 %vm2971_vm6, %v2483_v19 }
 0x327   :  { %2269 = vmatmul.mubr.msk.f32.vlgmr.msra.gmra.mrb[0].mxu1 %vm207_vm5, %v174_v48 }
 0x328   :  { %2271 = vmatprep.mubr.msk.f32.mxu1 %vm207_vm5, %v180_v53 }
 0x32b   :  { %2272 = vmatmul.mubr.msk.f32.gmra.mrb[2].mxu1 %vm207_vm5, %v182_v52 }
 0x32c   :  { %2274 = vmatprep.mubr.msk.f32.mxu1 %vm207_vm5, %v184_v55 }
 0x32f   :  { %2275 = vmatmul.mubr.msk.f32.gmra.mrb[4].mxu1 %vm207_vm5, %v186_v57  ;;  %v3052_v57 = vld [vmem:[%s3455_s1 + $0x30] sm:$0xff]  ;;  %s2861_s1 = smov 32  }
 0x330   :  { %2277 = vmatprep.mubr.msk.f32.mxu1 %vm207_vm5, %v188_v56 }
 0x333   :  { %2278 = vmatmul.mubr.msk.f32.gmra.mrb[6].mxu1 %vm207_vm5, %v190_v63 }
 0x3fa   :  { %v2270_v20 = vpop.f32.mrb[0].mxu1 }
 0x3fb   :  { %v346_v22 = vmul.f32 0.35355338, %v2270_v20  ;;  %v306_v23 = vpop.f32.mrb[1].mxu1 }
 0x3fc   :  { %v345_v25 = vmul.f32 0.35355338, %v306_v23 }
 0x3fd   :  { %v354_v26 = vadd.f32 %v346_v22, %v3005_v21 }
 0x3fe   :  { %v2273_v27 = vpop.f32.mrb[2].mxu1  ;;  %v353_v28 = vadd.f32 %v345_v25, %v3010_v24 }
 0x3ff   :  { %v348_v30 = vmul.f32 0.35355338, %v2273_v27  ;;  %v316_v31 = vpop.f32.mrb[3].mxu1  ;;  %v365_v32 = vsel %vm361_vm7, %v354_v26, -inf }
 0x400   :  { %v347_v33 = vmul.f32 0.35355338, %v316_v31  ;;  %366 = vmax.xlane.f32.xlu1 %v365_v32  ;;  %v362_v34 = vsel %vm361_vm7, %v353_v28, -inf }
 0x401   :  { %363 = vmax.xlane.f32.xlu0 %v362_v34  ;;  %v356_v35 = vadd.f32 %v348_v30, %v3017_v29 }
 0x402   :  { %v2276_v37 = vpop.f32.mrb[4].mxu1  ;;  %v355_v43 = vadd.f32 %v347_v33, %v3025_v36 }
 0x403   :  { %v350_v39 = vmul.f32 0.35355338, %v2276_v37  ;;  %v326_v40 = vpop.f32.mrb[5].mxu1  ;;  %v371_v41 = vsel %vm361_vm7, %v356_v35, -inf }
 0x404   :  { %v349_v42 = vmul.f32 0.35355338, %v326_v40  ;;  %v368_v53 = vsel %vm361_vm7, %v355_v43, -inf }
 0x405   :  { %372 = vmax.xlane.f32.xlu0 %v371_v41  ;;  %v358_v44 = vadd.f32 %v350_v39, %v3030_v38 }
 0x406   :  { %v2279_v46 = vpop.f32.mrb[6].mxu1  ;;  %v357_v55 = vadd.f32 %v349_v42, %v3038_v45 }
 0x407   :  { %v352_v48 = vmul.f32 0.35355338, %v2279_v46  ;;  %v336_v49 = vpop.f32.mrb[7].mxu1  ;;  %v377_v50 = vsel %vm361_vm7, %v358_v44, -inf }
 0x408   :  { %v351_v52 = vmul.f32 0.35355338, %v336_v49  ;;  %378 = vmax.xlane.f32.xlu1 %v377_v50  ;;  %v374_v60 = vsel %vm361_vm7, %v357_v55, -inf }
 0x409   :  { %369 = vmax.xlane.f32.xlu0 %v368_v53  ;;  %v360_v56 = vadd.f32 %v352_v48, %v3043_v47 }
 0x40a   :  { %v359_v61 = vadd.f32 %v351_v52, %v3052_v57 }
 0x40b   :  { %v383_v59 = vsel %vm361_vm7, %v360_v56, -inf }
 0x40c   :  { %384 = vmax.xlane.f32.xlu1 %v383_v59  ;;  %v380_v63 = vsel %vm361_vm7, %v359_v61, -inf }
 0x40d   :  { %375 = vmax.xlane.f32.xlu0 %v374_v60 }
 0x411   :  { %381 = vmax.xlane.f32.xlu0 %v380_v63 }
 0x41d   :  { %2654 = vrot.lane.b32.xlu1 %v2961_v54, %s2860_s29 }
 0x427   :  { %2649 = vrot.lane.b32.xlu0 %v2955_v51, %s2860_s29 }
 0x48d   :  { %v367_v2 = vpop.xlane.xlu1 %366 }
 0x48e   :  { %v387_v4 = vsub.f32 %v354_v26, %v367_v2  ;;  %v364_v5 = vpop.xlane.xlu0 %363 }
 0x48f   :  { %v386_v6 = vsub.f32 %v353_v28, %v364_v5 }
 0x490   :  { %v396_v7 = vmul.f32 1.442695, %v387_v4  ;;  %v2668_v4 = vpack.i.bf16 %v2923_v15, %v2918_v14 }
 0x491   :  { %v394_v8 = vmul.f32 1.442695, %v386_v6 }
 0x492   :  { %2736 = vpow2.f32 %v396_v7  ;;  %v373_v9 = vpop.xlane.xlu0 %372 }
 0x493   :  { %2738 = vpow2.f32 %v394_v8  ;;  %v389_v10 = vsub.f32 %v356_v35, %v373_v9 }
 0x495   :  { %v400_v11 = vmul.f32 1.442695, %v389_v10  ;;  %v379_v12 = vpop.xlane.xlu1 %378 }
 0x496   :  { %v391_v13 = vsub.f32 %v358_v44, %v379_v12  ;;  %v370_v17 = vpop.xlane.xlu0 %369 }
 0x497   :  { %2740 = vpow2.f32 %v400_v11  ;;  %v388_v19 = vsub.f32 %v355_v43, %v370_v17 }
 0x498   :  { %v404_v54 = vmul.f32 1.442695, %v391_v13 }
 0x499   :  { %v398_v20 = vmul.f32 1.442695, %v388_v19  ;;  %v385_v22 = vpop.xlane.xlu1 %384 }
 0x49a   :  { %2742 = vpow2.f32 %v404_v54  ;;  %v393_v51 = vsub.f32 %v360_v56, %v385_v22  ;;  %v376_v23 = vpop.xlane.xlu0 %375 }
 0x49b   :  { %2744 = vpow2.f32 %v398_v20  ;;  %v390_v25 = vsub.f32 %v357_v55, %v376_v23 }
 0x49c   :  { %v3062_v26 = vpop.eup %2736  ;;  %v408_v27 = vmul.f32 1.442695, %v393_v51 }
 0x49d   :  { %v2739_v28 = vpop.eup %2738  ;;  %v402_v30 = vmul.f32 1.442695, %v390_v25  ;;  %v413_v31 = vsel %vm361_vm7, %v3062_v26, 0.0  ;;  %v2655_v37 = vpop.permute.xlu1 %2654 }
 0x49e   :  { %2746 = vpow2.f32 %v408_v27  ;;  %414 = vadd.xlane.f32.xlu1 %v413_v31  ;;  %v382_v32 = vpop.xlane.xlu0 %381  ;;  %v410_v33 = vsel %vm361_vm7, %v2739_v28, 0.0  ;;  %v2657_v46 = vunpack.i.h.bf16 %v2655_v37  ;;  %v2656_v48 = vunpack.i.l.bf16 %v2655_v37 }
 0x49f   :  { %2748 = vpow2.f32 %v402_v30  ;;  %v392_v34 = vsub.f32 %v359_v61, %v382_v32  ;;  %411 = vadd.xlane.f32.xlu0 %v410_v33 }
 0x4a0   :  { %v2493_v56 = vpack.c.bf16 %v2657_v46, %v2656_v48 }
 0x4a1   :  { %v3067_v35 = vpop.eup %2740  ;;  %v406_v39 = vmul.f32 1.442695, %v392_v34 }
 0x4a2   :  { %v2650_v40 = vpop.permute.xlu0 %2649  ;;  %v419_v41 = vsel %vm361_vm7, %v3067_v35, 0.0 }
 0x4a3   :  { %2750 = vpow2.f32 %v406_v39  ;;  %v2652_v42 = vunpack.i.h.bf16 %v2650_v40  ;;  %v2651_v43 = vunpack.i.l.bf16 %v2650_v40  ;;  %420 = vadd.xlane.f32.xlu1 %v419_v41 }
 0x4a4   :  { %v3071_v44 = vpop.eup %2742 }
 0x4a5   :  { %v2745_v49 = vpop.eup %2744  ;;  %v2489_v50 = vpack.c.bf16 %v2652_v42, %v2651_v43  ;;  %v425_v52 = vsel %vm361_vm7, %v3071_v44, 0.0 }
 0x4a6   :  { %v416_v53 = vsel %vm361_vm7, %v2745_v49, 0.0 }
 0x4a7   :  { %426 = vadd.xlane.f32.xlu1 %v425_v52  ;;  %417 = vadd.xlane.f32.xlu0 %v416_v53 }
 0x4a8   :  { %v3076_v55 = vpop.eup %2746  ;;  %2490 = vmatprep.subr.bf16.mxu0 %v2489_v50 }
 0x4a9   :  { %v2749_v59 = vpop.eup %2748  ;;  %2492 = vmatpush3.bf16.msra.mxu0 %v2489_v50  ;;  %v431_v60 = vsel %vm361_vm7, %v3076_v55, 0.0 }
 0x4aa   :  { %2494 = vmatprep.subr.bf16.mxu0 %v2493_v56  ;;  %v422_v61 = vsel %vm361_vm7, %v2749_v59, 0.0 }
 0x4ab   :  { %432 = vadd.xlane.f32.xlu1 %v431_v60  ;;  %423 = vadd.xlane.f32.xlu0 %v422_v61 }
 0x4ad   :  { %v2751_v63 = vpop.eup %2750  ;;  %2496 = vmatpush3.bf16.msra.mxu0 %v2493_v56 }
 0x4ae   :  { %v428_v2 = vsel %vm361_vm7, %v2751_v63, 0.0 }
 0x4af   :  { %429 = vadd.xlane.f32.xlu1 %v428_v2 }
 0x4c0   :  { %2664 = vrot.lane.b32.xlu1 %v2975_v3, %s2860_s29 }
 0x4c1   :  { %2659 = vrot.lane.b32.xlu0 %v2965_v58, %s2860_s29 }
 0x4c5   :  { %2669 = vrot.lane.b32.xlu0 %v2668_v4, %s2861_s1 }
 0x52b   :  { %v415_v5 = vpop.xlane.xlu1 %414 }
 0x52c   :  { %v412_v6 = vpop.xlane.xlu0 %411 }
 0x52d   :  { %2752 = vrcp.f32 %v412_v6 }
 0x52e   :  { %2754 = vrcp.f32 %v415_v5 }
 0x530   :  { %v421_v7 = vpop.xlane.xlu1 %420 }
 0x534   :  { %v427_v8 = vpop.xlane.xlu1 %426  ;;  %v418_v9 = vpop.xlane.xlu0 %417 }
 0x535   :  { %2756 = vrcp.f32 %v418_v9 }
 0x536   :  { %2758 = vrcp.f32 %v421_v7 }
 0x537   :  { %v2753_v10 = vpop.eup %2752 }
 0x538   :  { %v433_v11 = vpop.xlane.xlu1 %432  ;;  %v424_v12 = vpop.xlane.xlu0 %423  ;;  %v442_v13 = vmul.f32 %v2753_v10, %v2739_v28 }
 0x539   :  { %2760 = vrcp.f32 %v424_v12  ;;  %v2755_v51 = vpop.eup %2754 }
 0x53a   :  { %2296 = vmatprep.mubr.msk.f32.mxu0 %vm361_vm7, %v442_v13  ;;  %2762 = vrcp.f32 %v427_v8  ;;  %v443_v25 = vmul.f32 %v2755_v51, %v3062_v26  ;;  %v2038_v13 = vld [vmem:[%s3458_s4 + $0x1] ss:$0 sm:$0xff] }
 0x53c   :  { %v430_v58 = vpop.xlane.xlu1 %429  ;;  %v2660_v3 = vpop.permute.xlu0 %2659 }
 0x53d   :  { %v2662_v14 = vunpack.i.h.bf16 %v2660_v3  ;;  %v2661_v15 = vunpack.i.l.bf16 %v2660_v3  ;;  %2764 = vrcp.f32 %v430_v58 }
 0x53e   :  { %2766 = vrcp.f32 %v433_v11 }
 0x53f   :  { %v2497_v17 = vpack.c.bf16 %v2662_v14, %v2661_v15  ;;  %v2757_v23 = vpop.eup %2756 }
 0x540   :  { %v2665_v19 = vpop.permute.xlu1 %2664  ;;  %v2759_v27 = vpop.eup %2758  ;;  %v444_v28 = vmul.f32 %v2757_v23, %v2745_v49 }
 0x541   :  { %v2667_v54 = vunpack.i.h.bf16 %v2665_v19  ;;  %v2666_v20 = vunpack.i.l.bf16 %v2665_v19  ;;  %2498 = vmatprep.subr.bf16.mxu0 %v2497_v17  ;;  %v445_v31 = vmul.f32 %v2759_v27, %v3067_v35  ;;  %v2673_v35 = vpack.i.bf16 %v2935_v18, %v2928_v16  ;;  %v2670_v41 = vpop.permute.xlu0 %2669 }
 0x542   :  { %2500 = vmatpush3.bf16.msra.mxu0 %v2497_v17  ;;  %v2672_v42 = vunpack.i.h.bf16 %v2670_v41  ;;  %v2671_v43 = vunpack.i.l.bf16 %v2670_v41  ;;  %v891_v41 = vld [vmem:[%s3457_s3 + $0x10] sm:$0xff] }
 0x543   :  { %v2501_v22 = vpack.c.bf16 %v2667_v54, %v2666_v20  ;;  %v2761_v30 = vpop.eup %2760  ;;  %2674 = vrot.lane.b32.xlu1 %v2673_v35, %s2861_s1  ;;  %v890_v35 = vld [vmem:[%s3457_s3 + $0x8] sm:$0xff] }
 0x544   :  { %v2763_v32 = vpop.eup %2762  ;;  %v446_v33 = vmul.f32 %v2761_v30, %v2749_v59  ;;  %v2505_v46 = vpack.c.bf16 %v2672_v42, %v2671_v43  ;;  %v892_v43 = vld [vmem:[%s3457_s3 + $0x18] sm:$0xff] }
 0x545   :  { %2502 = vmatprep.subr.bf16.mxu0 %v2501_v22  ;;  %v447_v37 = vmul.f32 %v2763_v32, %v3071_v44  ;;  %v797_v32 = vld [vmem:[%s3456_s2 + $0x8] sm:$0xff] }
 0x546   :  { %2504 = vmatpush3.bf16.msra.mxu0 %v2501_v22 }
 0x547   :  { %v2765_v34 = vpop.eup %2764  ;;  %2506 = vmatprep.subr.bf16.mxu0 %v2505_v46 }
 0x548   :  { %v2767_v39 = vpop.eup %2766  ;;  %v448_v26 = vmul.f32 %v2765_v34, %v2751_v63  ;;  %v799_v34 = vld [vmem:[%s3456_s2 + $0x28] sm:$0xff] }
 0x549   :  { %2297 = vmatmul.mubr.msk.f32.vlgmr.msra.gmra.mrb[2].mxu0 %vm361_vm7, %v443_v25  ;;  %v449_v40 = vmul.f32 %v2767_v39, %v3076_v55  ;;  %v800_v39 = vld [vmem:[%s3456_s2 + $0x38] sm:$0xff] }
 0x54a   :  { %2299 = vmatprep.mubr.msk.f32.mxu0 %vm361_vm7, %v444_v28  ;;  %2508 = vmatpush3.bf16.msra.mxu0 %v2505_v46  ;;  %v2525_v46 = vpack.c.bf16 %v892_v43, %v891_v41 }
 0x54d   :  { %2300 = vmatmul.mubr.msk.f32.gmra.mrb[4].mxu0 %vm361_vm7, %v445_v31 }
 0x54e   :  { %2302 = vmatprep.mubr.msk.f32.mxu0 %vm361_vm7, %v446_v33  ;;  %v798_v33 = vld [vmem:[%s3456_s2 + $0x18] sm:$0xff] }
 0x551   :  { %2303 = vmatmul.mubr.msk.f32.gmra.mrb[6].mxu0 %vm361_vm7, %v447_v37  ;;  %v2513_v37 = vpack.c.bf16 %v798_v33, %v797_v32 }
 0x552   :  { %2305 = vmatprep.mubr.msk.f32.mxu0 %vm361_vm7, %v448_v26  ;;  %v2517_v26 = vpack.c.bf16 %v800_v39, %v799_v34 }
 0x555   :  { %2306 = vmatmul.mubr.msk.f32.gmra.mrb[8].mxu0 %vm361_vm7, %v449_v40  ;;  %v889_v40 = vld [vmem:[%s3457_s3] sm:$0xff] }
 0x556   :  { %v2521_v42 = vpack.c.bf16 %v890_v35, %v889_v40 }
 0x558   :  { %2522 = vmatprep.subr.bf16.mxu1 %v2521_v42 }
 0x559   :  { %2524 = vmatpush3.bf16.msra.mxu1 %v2521_v42 }
 0x55a   :  { %2526 = vmatprep.subr.bf16.mxu1 %v2525_v46 }
 0x55d   :  { %2528 = vmatpush3.bf16.msra.mxu1 %v2525_v46 }
 0x5b5   :  { %v2675_v44 = vpop.permute.xlu1 %2674 }
 0x5b6   :  { %v2677_v48 = vunpack.i.h.bf16 %v2675_v44  ;;  %v2676_v49 = vunpack.i.l.bf16 %v2675_v44  ;;  %v893_v44 = vld [vmem:[%s3457_s3 + $0x20] sm:$0xff] }
 0x5b8   :  { %v2509_v50 = vpack.c.bf16 %v2677_v48, %v2676_v49  ;;  %v894_v48 = vld [vmem:[%s3457_s3 + $0x28] sm:$0xff] }
 0x5b9   :  { %v2529_v49 = vpack.c.bf16 %v894_v48, %v893_v44 }
 0x5ba   :  { %2510 = vmatprep.subr.bf16.mxu0 %v2509_v50 }
 0x5bb   :  { %2512 = vmatpush3.bf16.msra.mxu0 %v2509_v50  ;;  %2530 = vmatprep.subr.bf16.mxu1 %v2529_v49 }
 0x5bc   :  { %2514 = vmatprep.subr.bf16.mxu0 %v2513_v37  ;;  %2532 = vmatpush3.bf16.msra.mxu1 %v2529_v49 }
 0x61c   :  { %v2298_v52 = vpop.f32.mrb[2].mxu0 }
 0x61d   :  { %v564_v53 = vpop.f32.mrb[3].mxu0 }
 0x620   :  { %v2301_v55 = vpop.f32.mrb[4].mxu0 }
 0x621   :  { %607 = vrot.lane.b32.xlu1 %v2301_v55, %s2862_s30  ;;  %v574_v16 = vpop.f32.mrb[5].mxu0 }
 0x622   :  { %605 = vrot.lane.b32.xlu0 %v574_v16, %s2862_s30 }
 0x624   :  { %v2304_v18 = vpop.f32.mrb[6].mxu0 }
 0x625   :  { %615 = vrot.lane.b32.xlu1 %v2304_v18, %s2863_s6  ;;  %v584_v56 = vpop.f32.mrb[7].mxu0 }
 0x626   :  { %613 = vrot.lane.b32.xlu0 %v584_v56, %s2863_s6 }
 0x628   :  { %v2307_v59 = vpop.f32.mrb[8].mxu0 }
 0x629   :  { %623 = vrot.lane.b32.xlu1 %v2307_v59, %s2864_s7  ;;  %v594_v60 = vpop.f32.mrb[9].mxu0 }
 0x62a   :  { %621 = vrot.lane.b32.xlu0 %v594_v60, %s2864_s7 }
 0x693   :  { %v608_v61 = vpop.permute.xlu1 %607 }
 0x694   :  { %v606_v63 = vpop.permute.xlu0 %605  ;;  %v628_v7 = vsel %vm207_vm5, %v2298_v52, %v608_v61 }
 0x695   :  { %v627_v5 = vsel %vm207_vm5, %v564_v53, %v606_v63 }
 0x697   :  { %v616_v2 = vpop.permute.xlu1 %615 }
 0x698   :  { %v614_v4 = vpop.permute.xlu0 %613  ;;  %v631_v10 = vsel %vm629_vm8, %v628_v7, %v616_v2 }
 0x699   :  { %v630_v8 = vsel %vm629_vm8, %v627_v5, %v614_v4 }
 0x69b   :  { %v624_v6 = vpop.permute.xlu1 %623 }
 0x69c   :  { %v622_v9 = vpop.permute.xlu0 %621  ;;  %v634_v12 = vsel %vm632_vm9, %v631_v10, %v624_v6 }
 0x69d   :  { %v633_v11 = vsel %vm632_vm9, %v630_v8, %v622_v9  ;;  %v2041_v8 = vld [vmem:[%s3458_s4 + $0x6] ss:$0 sm:$0xff] }
 0x69e   :  { %2316 = vmatprep.mubr.msk.f32.mxu0 %vm33_vm0, %v633_v11  ;;  %v2042_v11 = vld [vmem:[%s3458_s4 + $0x7] ss:$0 sm:$0xff] }
 0x69f   :  { %2317 = vmatmul.mubr.msk.f32.vlgmr.msra.gmra.mrb[10].mxu0 %vm33_vm0, %v634_v12 }
 0x6a0   :  { %2516 = vmatpush3.bf16.msra.mxu0 %v2513_v37 }
 0x6a1   :  { %2518 = vmatprep.subr.bf16.mxu0 %v2517_v26 }
 0x6a4   :  { %2520 = vmatpush3.bf16.msra.mxu0 %v2517_v26 }
 0x772   :  { %v2318_v58 = vpop.f32.mrb[10].mxu0 }
 0x773   :  { %v738_v3 = vadd.f32 %v2318_v58, %v2038_v13  ;;  %v732_v14 = vpop.f32.mrb[11].mxu0 }
 0x774   :  { %v733_v15 = vadd.f32 %v2038_v13, %v732_v14 }
 0x775   :  { %v3122_v17 = vadd.f32 %v738_v3, %v2905_v1 }
 0x776   :  { %v3125_v19 = vadd.f32 %v733_v15, %v2900_v0 }
 0x777   :  { %v748_v54 = vsel %vm33_vm0, %v3122_v17, 0.0 }
 0x778   :  { %749 = vadd.xlane.f32.xlu1 %v748_v54  ;;  %v745_v20 = vsel %vm33_vm0, %v3125_v19, 0.0  ;;  %v895_v54 = vld [vmem:[%s3457_s3 + $0x30] sm:$0xff] }
 0x779   :  { %746 = vadd.xlane.f32.xlu0 %v745_v20  ;;  %v896_v20 = vld [vmem:[%s3457_s3 + $0x38] sm:$0xff] }
 0x805   :  { %v750_v22 = vpop.xlane.xlu1 %749 }
 0x806   :  { %v752_v51 = vmul.f32 0.03125, %v750_v22  ;;  %v747_v23 = vpop.xlane.xlu0 %746  ;;  %v2533_v22 = vpack.c.bf16 %v896_v20, %v895_v54  ;;  %v2052_v20 = vld [vmem:[%s3458_s4 + $0xd] ss:$0 sm:$0xff] }
 0x807   :  { %v751_v25 = vmul.f32 0.03125, %v747_v23 }
 0x808   :  { %v754_v27 = vsub.f32 %v3122_v17, %v752_v51  ;;  %2534 = vmatprep.subr.bf16.mxu1 %v2533_v22  ;;  %v2043_v51 = vld [vmem:[%s3458_s4 + $0x2] ss:$0 sm:$0xff] }
 0x809   :  { %v753_v1 = vsub.f32 %v3125_v19, %v751_v25  ;;  %2536 = vmatpush3.bf16.msra.mxu1 %v2533_v22 }
 0x80a   :  { %v756_v30 = vmul.f32 %v754_v27, %v754_v27  ;;  %v770_v13 = vmul.f32 %v2041_v8, %v754_v27 }
 0x80b   :  { %v755_v28 = vmul.f32 %v753_v1, %v753_v1  ;;  %v769_v9 = vmul.f32 %v2041_v8, %v753_v1 }
 0x80c   :  { %v760_v31 = vsel %vm33_vm0, %v756_v30, 0.0  ;;  %v2046_v30 = vld [vmem:[%s3458_s4 + $0x3] ss:$0 sm:$0xff] }
 0x80d   :  { %v757_v0 = vsel %vm33_vm0, %v755_v28, 0.0 }
 0x80e   :  { %758 = vadd.xlane.f32.xlu0 %v757_v0 }
 0x812   :  { %761 = vadd.xlane.f32.xlu0 %v760_v31 }
 0x89b   :  { %v759_v50 = vpop.xlane.xlu0 %758 }
 0x89c   :  { %v763_v52 = vmul.f32 0.032258064, %v759_v50  ;;  %v3204_v50 = vld [vmem:[%s3456_s2 + $0x40] sm:$0xff] }
 0x89e   :  { %2768 = vrsqrt.f32 %v763_v52  ;;  %vm773_vm10 = vcmp.eq.f32.partialorder %v763_v52, inf  ;;  %v776_v56 = vand.u32 2147483648, %v763_v52  ;;  %vm775_vm11 = vcmp.eq.f32.partialorder %v763_v52, 0.0 }
 0x89f   :  { %v762_v53 = vpop.xlane.xlu0 %761 }
 0x8a0   :  { %v764_v55 = vmul.f32 0.032258064, %v762_v53  ;;  %v3214_v53 = vld [vmem:[%s3456_s2 + $0x60] sm:$0xff] }
 0x8a2   :  { %2770 = vrsqrt.f32 %v764_v55  ;;  %vm780_vm12 = vcmp.eq.f32.partialorder %v764_v55, inf  ;;  %v783_v4 = vand.u32 2147483648, %v764_v55  ;;  %vm782_vm13 = vcmp.eq.f32.partialorder %v764_v55, 0.0 }
 0x8a8   :  { %v2769_v16 = vpop.eup %2768 }
 0x8a9   :  { %v772_v18 = vmul.f32 %v2769_v16, %v763_v52  ;;  %v3221_v16 = vld [vmem:[%s3456_s2 + $0x70] sm:$0xff] }
 0x8ab   :  { %v774_v59 = vsel %vm773_vm10, %v763_v52, %v772_v18  ;;  %v3209_v52 = vld [vmem:[%s3456_s2 + $0x50] sm:$0xff]  ;;  %v2541_v18 = vpack.c.bf16 %v3221_v16, %v3214_v53 }
 0x8ac   :  { %v2771_v60 = vpop.eup %2770  ;;  %v777_v61 = vsel %vm775_vm11, %v776_v56, %v774_v59 }
 0x8ad   :  { %v779_v63 = vmul.f32 %v2771_v60, %v764_v55  ;;  %v785_v2 = vadd.f32 1e-06, %v777_v61 }
 0x8af   :  { %v781_v5 = vsel %vm780_vm12, %v764_v55, %v779_v63  ;;  %2772 = vrcp.f32 %v785_v2  ;;  %v2537_v55 = vpack.c.bf16 %v3209_v52, %v3204_v50 }
 0x8b0   :  { %v784_v6 = vsel %vm782_vm13, %v783_v4, %v781_v5 }
 0x8b1   :  { %v786_v7 = vadd.f32 1e-06, %v784_v6  ;;  %2538 = vmatprep.subr.bf16.mxu0 %v2537_v55 }
 0x8b3   :  { %2774 = vrcp.f32 %v786_v7 }
 0x8b9   :  { %v2773_v10 = vpop.eup %2772 }
 0x8ba   :  { %v788_v12 = vmul.f32 %v2773_v10, %v769_v9 }
 0x8bc   :  { %v795_v58 = vadd.f32 %v2042_v11, %v788_v12 }
 0x8bd   :  { %v2775_v3 = vpop.eup %2774 }
 0x8be   :  { %v790_v14 = vmul.f32 %v2775_v3, %v770_v13  ;;  %2327 = vmatprep.mubr.msk.f32.mxu0 %vm33_vm0, %v795_v58  ;;  %v2051_v58 = vld [vmem:[%s3458_s4 + $0xc] ss:$0 sm:$0xff] }
 0x8c0   :  { %v796_v15 = vadd.f32 %v2042_v11, %v790_v14 }
 0x8c2   :  { %2328 = vmatmul.mubr.msk.f32.vlgmr.msra.gmra.mrb[12].mxu0 %vm33_vm0, %v796_v15 }
 0x8c3   :  { %2540 = vmatpush3.bf16.msra.mxu0 %v2537_v55 }
 0x8c4   :  { %2542 = vmatprep.subr.bf16.mxu0 %v2541_v18 }
 0x8c7   :  { %2544 = vmatpush3.bf16.msra.mxu0 %v2541_v18 }
 0x995   :  { %v2329_v23 = vpop.f32.mrb[12].mxu0 }
 0x996   :  { %v884_v25 = vadd.f32 %v2329_v23, %v2043_v51  ;;  %v878_v27 = vpop.f32.mrb[13].mxu0 }
 0x997   :  { %v879_v1 = vadd.f32 %v2043_v51, %v878_v27  ;;  %v2058_v27 = vld [vmem:[%s3458_s4 + $0x8] ss:$0 sm:$0xff] }
 0x998   :  { %v888_v0 = vmax.f32 %v884_v25, 0.0 }
 0x999   :  { %v887_v28 = vmax.f32 %v879_v1, 0.0 }
 0x99b   :  { %2346 = vmatprep.mubr.msk.f32.mxu1 %vm361_vm7, %v887_v28 }
 0x99c   :  { %2347 = vmatmul.mubr.msk.f32.vlgmr.msra.gmra.mrb[8].mxu1 %vm361_vm7, %v888_v0 }
 0xa6f   :  { %v2348_v31 = vpop.f32.mrb[8].mxu1 }
 0xa70   :  { %v980_v32 = vadd.f32 %v2348_v31, %v2046_v30  ;;  %v974_v33 = vpop.f32.mrb[9].mxu1 }
 0xa71   :  { %v975_v34 = vadd.f32 %v2046_v30, %v974_v33 }
 0xa72   :  { %v3188_v37 = vadd.f32 %v980_v32, %v3122_v17 }
 0xa73   :  { %v3191_v39 = vadd.f32 %v975_v34, %v3125_v19 }
 0xa74   :  { %v991_v26 = vsel %vm33_vm0, %v3188_v37, 0.0 }
 0xa75   :  { %992 = vadd.xlane.f32.xlu1 %v991_v26  ;;  %v988_v40 = vsel %vm33_vm0, %v3191_v39, 0.0 }
 0xa76   :  { %989 = vadd.xlane.f32.xlu0 %v988_v40 }
 0xb02   :  { %v993_v35 = vpop.xlane.xlu1 %992 }
 0xb03   :  { %v995_v41 = vmul.f32 0.03125, %v993_v35  ;;  %v990_v42 = vpop.xlane.xlu0 %989 }
 0xb04   :  { %v994_v43 = vmul.f32 0.03125, %v990_v42 }
 0xb05   :  { %v997_v46 = vsub.f32 %v3188_v37, %v995_v41 }
 0xb06   :  { %v996_v17 = vsub.f32 %v3191_v39, %v994_v43 }
 0xb07   :  { %v999_v44 = vmul.f32 %v997_v46, %v997_v46  ;;  %v1013_v3 = vmul.f32 %v2051_v58, %v997_v46 }
 0xb08   :  { %v998_v48 = vmul.f32 %v996_v17, %v996_v17  ;;  %v1012_v15 = vmul.f32 %v2051_v58, %v996_v17 }
 0xb09   :  { %v1003_v19 = vsel %vm33_vm0, %v999_v44, 0.0 }
 0xb0a   :  { %1004 = vadd.xlane.f32.xlu1 %v1003_v19  ;;  %v1000_v49 = vsel %vm33_vm0, %v998_v48, 0.0 }
 0xb0b   :  { %1001 = vadd.xlane.f32.xlu0 %v1000_v49 }
 0xb97   :  { %v1005_v56 = vpop.xlane.xlu1 %1004 }
 0xb98   :  { %v1007_v59 = vmul.f32 0.032258064, %v1005_v56  ;;  %v1002_v60 = vpop.xlane.xlu0 %1001 }
 0xb99   :  { %v1006_v61 = vmul.f32 0.032258064, %v1002_v60 }
 0xb9a   :  { %2776 = vrsqrt.f32 %v1007_v59  ;;  %vm1023_vm14 = vcmp.eq.f32.partialorder %v1007_v59, inf  ;;  %v1026_v5 = vand.u32 2147483648, %v1007_v59  ;;  %vm1025_vm15 = vcmp.eq.f32.partialorder %v1007_v59, 0.0 }
 0xb9b   :  { %2778 = vrsqrt.f32 %v1006_v61  ;;  %vm1016_vm1 = vcmp.eq.f32.partialorder %v1006_v61, inf  ;;  %v1019_v8 = vand.u32 2147483648, %v1006_v61  ;;  %vm1018_vm2 = vcmp.eq.f32.partialorder %v1006_v61, 0.0 }
 0xba4   :  { %v2777_v63 = vpop.eup %2776 }
 0xba5   :  { %v2779_v2 = vpop.eup %2778  ;;  %v1022_v4 = vmul.f32 %v2777_v63, %v1007_v59 }
 0xba6   :  { %v1015_v6 = vmul.f32 %v2779_v2, %v1006_v61 }
 0xba7   :  { %v1024_v7 = vsel %vm1023_vm14, %v1007_v59, %v1022_v4 }
 0xba8   :  { %v1027_v9 = vsel %vm1025_vm15, %v1026_v5, %v1024_v7  ;;  %v1017_v10 = vsel %vm1016_vm1, %v1006_v61, %v1015_v6 }
 0xba9   :  { %v1029_v11 = vadd.f32 1e-06, %v1027_v9  ;;  %v1020_v12 = vsel %vm1018_vm2, %v1019_v8, %v1017_v10 }
 0xbaa   :  { %v1028_v13 = vadd.f32 1e-06, %v1020_v12 }
 0xbab   :  { %2780 = vrcp.f32 %v1029_v11 }
 0xbac   :  { %2782 = vrcp.f32 %v1028_v13 }
 0xbb5   :  { %v2781_v14 = vpop.eup %2780 }
 0xbb6   :  { %v2783_v54 = vpop.eup %2782  ;;  %v1033_v22 = vmul.f32 %v2781_v14, %v1013_v3 }
 0xbb7   :  { %v1031_v51 = vmul.f32 %v2783_v54, %v1012_v15 }
 0xbb8   :  { %v1039_v25 = vadd.f32 %v2052_v20, %v1033_v22 }
 0xbb9   :  { %v1038_v23 = vadd.f32 %v2052_v20, %v1031_v51 }
 0xbbb   :  { %2357 = vmatprep.mubr.msk.f32.mxu0 %vm33_vm0, %v1038_v23 }
 0xbbc   :  { %2358 = vmatmul.mubr.msk.f32.vlgmr.msra.gmra.mrb[14].mxu0 %vm33_vm0, %v1039_v25 }
 0xc8f   :  { %v2359_v1 = vpop.f32.mrb[14].mxu0 }
 0xc90   :  { %v1128_v28 = vadd.f32 %v2359_v1, %v2058_v27  ;;  %v1122_v0 = vpop.f32.mrb[15].mxu0 }
 0xc91   :  { %v1123_v30 = vadd.f32 %v2058_v27, %v1122_v0 }
 0xc92   :  { %1135 = vrot.lane.b32.xlu1 %v1128_v28, %s2856_s10 }
 0xc93   :  { %1133 = vrot.lane.b32.xlu0 %v1123_v30, %s2856_s10  ;;  %2376 = vmatprep.mubr.msk.f32.mxu1 %vm207_vm5, %v1123_v30  ;;  %v3241_v31 = vpack.i.bf16 %v1128_v28, %v1123_v30 }
 0xc96   :  { %1137 = vrot.lane.b32.xlu1 %v1123_v30, %s2857_s11 }
 0xc97   :  { %1141 = vrot.lane.b32.xlu0 %v1123_v30, %s2858_s12 }
 0xc9a   :  { %1139 = vrot.lane.b32.xlu1 %v1128_v28, %s2857_s11 }
 0xc9b   :  { %2679 = vrot.lane.b32.xlu0 %v3241_v31, %s2859_s13 }
 0xc9e   :  { %1143 = vrot.lane.b32.xlu1 %v1128_v28, %s2858_s12 }
 0xd04   :  { %v1136_v32 = vpop.permute.xlu1 %1135 }
 0xd05   :  { %v1134_v33 = vpop.permute.xlu0 %1133 }
 0xd06   :  { %v3247_v34 = vpack.i.bf16 %v1136_v32, %v1134_v33 }
 0xd08   :  { %v1138_v26 = vpop.permute.xlu1 %1137  ;;  %2684 = vrot.lane.b32.xlu1 %v3247_v34, %s2859_s13 }
 0xd09   :  { %v1142_v40 = vpop.permute.xlu0 %1141 }
 0xd0c   :  { %v1140_v35 = vpop.permute.xlu1 %1139 }
 0xd0d   :  { %v3251_v41 = vpack.i.bf16 %v1140_v35, %v1138_v26  ;;  %v2680_v42 = vpop.permute.xlu0 %2679 }
 0xd0e   :  { %v2682_v43 = vunpack.i.h.bf16 %v2680_v42  ;;  %v2681_v46 = vunpack.i.l.bf16 %v2680_v42 }
 0xd0f   :  { %2689 = vrot.lane.b32.xlu0 %v3251_v41, %s2859_s13 }
 0xd10   :  { %v2545_v17 = vpack.c.bf16 %v2682_v43, %v2681_v46  ;;  %v1144_v44 = vpop.permute.xlu1 %1143 }
 0xd11   :  { %v3255_v48 = vpack.i.bf16 %v1144_v44, %v1142_v40 }
 0xd12   :  { %2547 = vmatprep.subr.msk.bf16.mxu1 %vm2971_vm6, %v2545_v17 }
 0xd13   :  { %2694 = vrot.lane.b32.xlu1 %v3255_v48, %s2859_s13  ;;  %2550 = vmatpush3.bf16.xpose.msk.msra.mxu1 %vm2971_vm6, %v2545_v17 }
 0xd7a   :  { %v2685_v19 = vpop.permute.xlu1 %2684 }
 0xd7b   :  { %v2687_v49 = vunpack.i.h.bf16 %v2685_v19  ;;  %v2686_v55 = vunpack.i.l.bf16 %v2685_v19 }
 0xd7d   :  { %v2551_v18 = vpack.c.bf16 %v2687_v49, %v2686_v55 }
 0xd7f   :  { %2553 = vmatprep.subr.msk.bf16.mxu1 %vm2971_vm6, %v2551_v18 }
 0xd80   :  { %2556 = vmatpush3.bf16.xpose.msk.msra.mxu1 %vm2971_vm6, %v2551_v18 }
 0xd81   :  { %v2690_v56 = vpop.permute.xlu0 %2689 }
 0xd82   :  { %v2692_v59 = vunpack.i.h.bf16 %v2690_v56  ;;  %v2691_v60 = vunpack.i.l.bf16 %v2690_v56 }
 0xd84   :  { %v2557_v61 = vpack.c.bf16 %v2692_v59, %v2691_v60 }
 0xd85   :  { %v2695_v63 = vpop.permute.xlu1 %2694 }
 0xd86   :  { %v2697_v2 = vunpack.i.h.bf16 %v2695_v63  ;;  %v2696_v4 = vunpack.i.l.bf16 %v2695_v63  ;;  %2559 = vmatprep.subr.msk.bf16.mxu1 %vm2971_vm6, %v2557_v61 }
 0xd88   :  { %v2563_v5 = vpack.c.bf16 %v2697_v2, %v2696_v4  ;;  %2562 = vmatpush3.bf16.xpose.msk.msra.mxu1 %vm2971_vm6, %v2557_v61 }
 0xd8a   :  { %2565 = vmatprep.subr.msk.bf16.mxu1 %vm2971_vm6, %v2563_v5 }
 0xd90   :  { %2568 = vmatpush3.bf16.xpose.msk.msra.mxu1 %vm2971_vm6, %v2563_v5 }
 0xd97   :  { %2377 = vmatmul.mubr.msk.f32.vlgmr.msra.gmra.mrb[10].mxu1 %vm207_vm5, %v1128_v28 }
 0xd98   :  { %2379 = vmatprep.mubr.msk.f32.mxu1 %vm207_vm5, %v1134_v33 }
 0xd9b   :  { %2380 = vmatmul.mubr.msk.f32.gmra.mrb[12].mxu1 %vm207_vm5, %v1136_v32 }
 0xd9c   :  { %2382 = vmatprep.mubr.msk.f32.mxu1 %vm207_vm5, %v1138_v26 }
 0xd9f   :  { %2383 = vmatmul.mubr.msk.f32.gmra.mrb[14].mxu1 %vm207_vm5, %v1140_v35 }
 0xda0   :  { %2385 = vmatprep.mubr.msk.f32.mxu1 %vm207_vm5, %v1142_v40 }
 0xda3   :  { %2386 = vmatmul.mubr.msk.f32.gmra.mrb[16].mxu1 %vm207_vm5, %v1144_v44 }
 0xe6a   :  { %v2378_v6 = vpop.f32.mrb[10].mxu1 }
 0xe6b   :  { %v1299_v7 = vmul.f32 0.35355338, %v2378_v6  ;;  %v1259_v8 = vpop.f32.mrb[11].mxu1 }
 0xe6c   :  { %v1298_v9 = vmul.f32 0.35355338, %v1259_v8 }
 0xe6d   :  { %v1307_v62 = vadd.f32 %v1299_v7, %v3005_v21 }
 0xe6e   :  { %v2381_v10 = vpop.f32.mrb[12].mxu1  ;;  %v1306_v11 = vadd.f32 %v1298_v9, %v3010_v24 }
 0xe6f   :  { %v1301_v12 = vmul.f32 0.35355338, %v2381_v10  ;;  %v1269_v13 = vpop.f32.mrb[13].mxu1  ;;  %v1317_v58 = vsel %vm361_vm7, %v1307_v62, -inf }
 0xe70   :  { %v1300_v3 = vmul.f32 0.35355338, %v1269_v13  ;;  %1318 = vmax.xlane.f32.xlu1 %v1317_v58  ;;  %v1314_v14 = vsel %vm361_vm7, %v1306_v11, -inf }
 0xe71   :  { %1315 = vmax.xlane.f32.xlu0 %v1314_v14  ;;  %v1309_v15 = vadd.f32 %v1301_v12, %v3017_v29 }
 0xe72   :  { %v2384_v54 = vpop.f32.mrb[14].mxu1  ;;  %v1308_v23 = vadd.f32 %v1300_v3, %v3025_v36 }
 0xe73   :  { %v1303_v20 = vmul.f32 0.35355338, %v2384_v54  ;;  %v1279_v22 = vpop.f32.mrb[15].mxu1  ;;  %v1323_v51 = vsel %vm361_vm7, %v1309_v15, -inf }
 0xe74   :  { %v1302_v21 = vmul.f32 0.35355338, %v1279_v22  ;;  %v1320_v29 = vsel %vm361_vm7, %v1308_v23, -inf }
 0xe75   :  { %1324 = vmax.xlane.f32.xlu0 %v1323_v51  ;;  %v1311_v24 = vadd.f32 %v1303_v20, %v3030_v38 }
 0xe76   :  { %v2387_v25 = vpop.f32.mrb[16].mxu1  ;;  %v1310_v30 = vadd.f32 %v1302_v21, %v3038_v45 }
 0xe77   :  { %v1305_v27 = vmul.f32 0.35355338, %v2387_v25  ;;  %v1289_v1 = vpop.f32.mrb[17].mxu1  ;;  %v1329_v28 = vsel %vm361_vm7, %v1311_v24, -inf }
 0xe78   :  { %v1304_v0 = vmul.f32 0.35355338, %v1289_v1  ;;  %1330 = vmax.xlane.f32.xlu1 %v1329_v28  ;;  %v1326_v36 = vsel %vm361_vm7, %v1310_v30, -inf }
 0xe79   :  { %1321 = vmax.xlane.f32.xlu0 %v1320_v29  ;;  %v1313_v32 = vadd.f32 %v1305_v27, %v3043_v47 }
 0xe7a   :  { %v1312_v38 = vadd.f32 %v1304_v0, %v3052_v57  ;;  %v2718_v0 = vpack.i.bf16 %v3209_v52, %v3204_v50 }
 0xe7b   :  { %v1335_v33 = vsel %vm361_vm7, %v1313_v32, -inf }
 0xe7c   :  { %1336 = vmax.xlane.f32.xlu1 %v1335_v33  ;;  %v1332_v26 = vsel %vm361_vm7, %v1312_v38, -inf }
 0xe7d   :  { %1327 = vmax.xlane.f32.xlu0 %v1326_v36 }
 0xe81   :  { %1333 = vmax.xlane.f32.xlu0 %v1332_v26 }
 0xe8d   :  { %2704 = vrot.lane.b32.xlu1 %v3247_v34, %s2860_s29 }
 0xe97   :  { %2699 = vrot.lane.b32.xlu0 %v3241_v31, %s2860_s29 }
 0xefd   :  { %v1319_v45 = vpop.xlane.xlu1 %1318 }
 0xefe   :  { %v1339_v40 = vsub.f32 %v1307_v62, %v1319_v45  ;;  %v1316_v47 = vpop.xlane.xlu0 %1315 }
 0xeff   :  { %v1338_v35 = vsub.f32 %v1306_v11, %v1316_v47 }
 0xf00   :  { %v1348_v42 = vmul.f32 1.442695, %v1339_v40 }
 0xf01   :  { %v1346_v43 = vmul.f32 1.442695, %v1338_v35 }
 0xf02   :  { %2784 = vpow2.f32 %v1348_v42  ;;  %v1325_v46 = vpop.xlane.xlu0 %1324 }
 0xf03   :  { %2786 = vpow2.f32 %v1346_v43  ;;  %v1341_v57 = vsub.f32 %v1309_v15, %v1325_v46 }
 0xf05   :  { %v1352_v17 = vmul.f32 1.442695, %v1341_v57  ;;  %v1331_v44 = vpop.xlane.xlu1 %1330 }
 0xf06   :  { %v1343_v19 = vsub.f32 %v1311_v24, %v1331_v44  ;;  %v1322_v49 = vpop.xlane.xlu0 %1321 }
 0xf07   :  { %2788 = vpow2.f32 %v1352_v17  ;;  %v1340_v55 = vsub.f32 %v1308_v23, %v1322_v49 }
 0xf08   :  { %v1356_v34 = vmul.f32 1.442695, %v1343_v19 }
 0xf09   :  { %v1350_v18 = vmul.f32 1.442695, %v1340_v55  ;;  %v1337_v56 = vpop.xlane.xlu1 %1336 }
 0xf0a   :  { %2790 = vpow2.f32 %v1356_v34  ;;  %v1345_v31 = vsub.f32 %v1313_v32, %v1337_v56  ;;  %v1328_v59 = vpop.xlane.xlu0 %1327 }
 0xf0b   :  { %2792 = vpow2.f32 %v1350_v18  ;;  %v1342_v60 = vsub.f32 %v1310_v30, %v1328_v59 }
 0xf0c   :  { %v3302_v61 = vpop.eup %2784  ;;  %v1360_v63 = vmul.f32 1.442695, %v1345_v31 }
 0xf0d   :  { %v2787_v2 = vpop.eup %2786  ;;  %v1354_v4 = vmul.f32 1.442695, %v1342_v60  ;;  %v1365_v5 = vsel %vm361_vm7, %v3302_v61, 0.0  ;;  %v2705_v62 = vpop.permute.xlu1 %2704 }
 0xf0e   :  { %2794 = vpow2.f32 %v1360_v63  ;;  %1366 = vadd.xlane.f32.xlu1 %v1365_v5  ;;  %v1334_v6 = vpop.xlane.xlu0 %1333  ;;  %v1362_v7 = vsel %vm361_vm7, %v2787_v2, 0.0  ;;  %v2707_v14 = vunpack.i.h.bf16 %v2705_v62  ;;  %v2706_v15 = vunpack.i.l.bf16 %v2705_v62 }
 0xf0f   :  { %2796 = vpow2.f32 %v1354_v4  ;;  %v1344_v8 = vsub.f32 %v1312_v38, %v1334_v6  ;;  %1363 = vadd.xlane.f32.xlu0 %v1362_v7 }
 0xf10   :  { %v2573_v23 = vpack.c.bf16 %v2707_v14, %v2706_v15 }
 0xf11   :  { %v3307_v9 = vpop.eup %2788  ;;  %v1358_v10 = vmul.f32 1.442695, %v1344_v8 }
 0xf12   :  { %v2700_v11 = vpop.permute.xlu0 %2699  ;;  %v1371_v12 = vsel %vm361_vm7, %v3307_v9, 0.0 }
 0xf13   :  { %2798 = vpow2.f32 %v1358_v10  ;;  %v2702_v13 = vunpack.i.h.bf16 %v2700_v11  ;;  %v2701_v58 = vunpack.i.l.bf16 %v2700_v11  ;;  %1372 = vadd.xlane.f32.xlu1 %v1371_v12 }
 0xf14   :  { %v3311_v3 = vpop.eup %2790 }
 0xf15   :  { %v2793_v54 = vpop.eup %2792  ;;  %v2569_v20 = vpack.c.bf16 %v2702_v13, %v2701_v58  ;;  %v1377_v22 = vsel %vm361_vm7, %v3311_v3, 0.0 }
 0xf16   :  { %v1368_v51 = vsel %vm361_vm7, %v2793_v54, 0.0 }
 0xf17   :  { %1378 = vadd.xlane.f32.xlu1 %v1377_v22  ;;  %1369 = vadd.xlane.f32.xlu0 %v1368_v51 }
 0xf18   :  { %v3316_v21 = vpop.eup %2794  ;;  %2570 = vmatprep.subr.bf16.mxu0 %v2569_v20 }
 0xf19   :  { %v2797_v24 = vpop.eup %2796  ;;  %2572 = vmatpush3.bf16.msra.mxu0 %v2569_v20  ;;  %v1383_v25 = vsel %vm361_vm7, %v3316_v21, 0.0 }
 0xf1a   :  { %2574 = vmatprep.subr.bf16.mxu0 %v2573_v23  ;;  %v1374_v27 = vsel %vm361_vm7, %v2797_v24, 0.0 }
 0xf1b   :  { %1384 = vadd.xlane.f32.xlu1 %v1383_v25  ;;  %1375 = vadd.xlane.f32.xlu0 %v1374_v27 }
 0xf1d   :  { %v2799_v1 = vpop.eup %2798  ;;  %2576 = vmatpush3.bf16.msra.mxu0 %v2573_v23 }
 0xf1e   :  { %v1380_v28 = vsel %vm361_vm7, %v2799_v1, 0.0 }
 0xf1f   :  { %1381 = vadd.xlane.f32.xlu1 %v1380_v28 }
 0xf30   :  { %2714 = vrot.lane.b32.xlu1 %v3255_v48, %s2860_s29 }
 0xf31   :  { %2709 = vrot.lane.b32.xlu0 %v3251_v41, %s2860_s29 }
 0xf35   :  { %2719 = vrot.lane.b32.xlu0 %v2718_v0, %s2861_s1  ;;  %v2090_v0 = vld [vmem:[%s3458_s4 + $0x9] ss:$0 sm:$0xff] }
 0xf9b   :  { %v1367_v29 = vpop.xlane.xlu1 %1366 }
 0xf9c   :  { %v1364_v30 = vpop.xlane.xlu0 %1363 }
 0xf9d   :  { %2800 = vrcp.f32 %v1364_v30 }
 0xf9e   :  { %2802 = vrcp.f32 %v1367_v29 }
 0xfa0   :  { %v1373_v32 = vpop.xlane.xlu1 %1372 }
 0xfa4   :  { %v1379_v33 = vpop.xlane.xlu1 %1378  ;;  %v1370_v36 = vpop.xlane.xlu0 %1369 }
 0xfa5   :  { %2804 = vrcp.f32 %v1370_v36 }
 0xfa6   :  { %2806 = vrcp.f32 %v1373_v32 }
 0xfa7   :  { %v2801_v38 = vpop.eup %2800 }
 0xfa8   :  { %v1385_v26 = vpop.xlane.xlu1 %1384  ;;  %v1376_v45 = vpop.xlane.xlu0 %1375  ;;  %v1394_v40 = vmul.f32 %v2801_v38, %v2787_v2  ;;  %v2723_v2 = vpack.i.bf16 %v3221_v16, %v3214_v53 }
 0xfa9   :  { %2808 = vrcp.f32 %v1376_v45  ;;  %v2803_v57 = vpop.eup %2802 }
 0xfaa   :  { %2404 = vmatprep.mubr.msk.f32.mxu0 %vm361_vm7, %v1394_v40  ;;  %2810 = vrcp.f32 %v1379_v33  ;;  %v1395_v44 = vmul.f32 %v2803_v57, %v3302_v61  ;;  %2724 = vrot.lane.b32.xlu1 %v2723_v2, %s2861_s1  ;;  %v2099_v57 = vld [vmem:[%s3456_s2 + $0x68] sm:$0xff] }
 0xfac   :  { %v1382_v41 = vpop.xlane.xlu1 %1381  ;;  %v2710_v48 = vpop.permute.xlu0 %2709 }
 0xfad   :  { %v2712_v47 = vunpack.i.h.bf16 %v2710_v48  ;;  %v2711_v50 = vunpack.i.l.bf16 %v2710_v48  ;;  %2812 = vrcp.f32 %v1382_v41 }
 0xfae   :  { %2814 = vrcp.f32 %v1385_v26 }
 0xfaf   :  { %v2577_v52 = vpack.c.bf16 %v2712_v47, %v2711_v50  ;;  %v2805_v17 = vpop.eup %2804 }
 0xfb0   :  { %v2715_v35 = vpop.permute.xlu1 %2714  ;;  %v2807_v19 = vpop.eup %2806  ;;  %v1396_v49 = vmul.f32 %v2805_v17, %v2793_v54 }
 0xfb1   :  { %v2717_v42 = vunpack.i.h.bf16 %v2715_v35  ;;  %v2716_v43 = vunpack.i.l.bf16 %v2715_v35  ;;  %2578 = vmatprep.subr.bf16.mxu0 %v2577_v52  ;;  %v1397_v34 = vmul.f32 %v2807_v19, %v3307_v9  ;;  %v2720_v4 = vpop.permute.xlu0 %2719 }
 0xfb2   :  { %2580 = vmatpush3.bf16.msra.mxu0 %v2577_v52  ;;  %v2722_v5 = vunpack.i.h.bf16 %v2720_v4  ;;  %v2721_v6 = vunpack.i.l.bf16 %v2720_v4 }
 0xfb3   :  { %v2581_v46 = vpack.c.bf16 %v2717_v42, %v2716_v43  ;;  %v2809_v55 = vpop.eup %2808  ;;  %v2097_v43 = vld [vmem:[%s3456_s2 + $0x48] sm:$0xff] }
 0xfb4   :  { %v2811_v18 = vpop.eup %2810  ;;  %v1398_v56 = vmul.f32 %v2809_v55, %v2797_v24  ;;  %v2585_v7 = vpack.c.bf16 %v2722_v5, %v2721_v6  ;;  %v2106_v55 = vld [vmem:[%s3457_s3 + $0x48] sm:$0xff] }
 0xfb5   :  { %2582 = vmatprep.subr.bf16.mxu0 %v2581_v46  ;;  %v1399_v59 = vmul.f32 %v2811_v18, %v3311_v3 }
 0xfb6   :  { %2584 = vmatpush3.bf16.msra.mxu0 %v2581_v46  ;;  %v2098_v46 = vld [vmem:[%s3456_s2 + $0x58] sm:$0xff] }
 0xfb7   :  { %v2813_v31 = vpop.eup %2812  ;;  %2586 = vmatprep.subr.bf16.mxu0 %v2585_v7  ;;  %v2593_v17 = vpack.c.bf16 %v2098_v46, %v2097_v43 }
 0xfb8   :  { %v2815_v60 = vpop.eup %2814  ;;  %v1400_v61 = vmul.f32 %v2813_v31, %v2799_v1 }
 0xfb9   :  { %2405 = vmatmul.mubr.msk.f32.vlgmr.msra.gmra.mrb[16].mxu0 %vm361_vm7, %v1395_v44  ;;  %v1401_v63 = vmul.f32 %v2815_v60, %v3316_v21  ;;  %v2100_v44 = vld [vmem:[%s3456_s2 + $0x78] sm:$0xff]  ;;  %v2110_v60 = vld [vmem:[%s3457_s3 + $0x68] sm:$0xff] }
 0xfba   :  { %2407 = vmatprep.mubr.msk.f32.mxu0 %vm361_vm7, %v1396_v49  ;;  %2588 = vmatpush3.bf16.msra.mxu0 %v2585_v7  ;;  %v2597_v19 = vpack.c.bf16 %v2100_v44, %v2099_v57  ;;  %v2105_v49 = vld [vmem:[%s3457_s3 + $0x40] sm:$0xff] }
 0xfbb   :  { %v2601_v18 = vpack.c.bf16 %v2106_v55, %v2105_v49 }
 0xfbd   :  { %2408 = vmatmul.mubr.msk.f32.gmra.mrb[18].mxu0 %vm361_vm7, %v1397_v34  ;;  %v2107_v34 = vld [vmem:[%s3457_s3 + $0x50] sm:$0xff]  ;;  %2602 = vmatprep.subr.bf16.mxu1 %v2601_v18 }
 0xfbe   :  { %2410 = vmatprep.mubr.msk.f32.mxu0 %vm361_vm7, %v1398_v56  ;;  %v2108_v56 = vld [vmem:[%s3457_s3 + $0x58] sm:$0xff]  ;;  %2604 = vmatpush3.bf16.msra.mxu1 %v2601_v18 }
 0xfbf   :  { %v2605_v31 = vpack.c.bf16 %v2108_v56, %v2107_v34 }
 0xfc1   :  { %2411 = vmatmul.mubr.msk.f32.gmra.mrb[20].mxu0 %vm361_vm7, %v1399_v59  ;;  %v2109_v59 = vld [vmem:[%s3457_s3 + $0x60] sm:$0xff]  ;;  %2606 = vmatprep.subr.bf16.mxu1 %v2605_v31 }
 0xfc2   :  { %2413 = vmatprep.mubr.msk.f32.mxu0 %vm361_vm7, %v1400_v61  ;;  %v2609_v61 = vpack.c.bf16 %v2110_v60, %v2109_v59  ;;  %2608 = vmatpush3.bf16.msra.mxu1 %v2605_v31 }
 0xfc4   :  { %2610 = vmatprep.subr.bf16.mxu1 %v2609_v61 }
 0xfc5   :  { %2414 = vmatmul.mubr.msk.f32.gmra.mrb[22].mxu0 %vm361_vm7, %v1401_v63 }
 0xfc6   :  { %2612 = vmatpush3.bf16.msra.mxu1 %v2609_v61 }
0x101c   :  { %v2725_v8 = vpop.permute.xlu1 %2724 }
0x101d   :  { %v2727_v9 = vunpack.i.h.bf16 %v2725_v8  ;;  %v2726_v62 = vunpack.i.l.bf16 %v2725_v8 }
0x101f   :  { %v2589_v10 = vpack.c.bf16 %v2727_v9, %v2726_v62 }
0x1021   :  { %2590 = vmatprep.subr.bf16.mxu0 %v2589_v10 }
0x1022   :  { %2592 = vmatpush3.bf16.msra.mxu0 %v2589_v10 }
0x1023   :  { %2594 = vmatprep.subr.bf16.mxu0 %v2593_v17 }
0x108c   :  { %v2406_v11 = vpop.f32.mrb[16].mxu0 }
0x108d   :  { %v1516_v12 = vpop.f32.mrb[17].mxu0 }
0x1090   :  { %v2409_v13 = vpop.f32.mrb[18].mxu0 }
0x1091   :  { %1559 = vrot.lane.b32.xlu1 %v2409_v13, %s2862_s30  ;;  %v1526_v53 = vpop.f32.mrb[19].mxu0 }
0x1092   :  { %1557 = vrot.lane.b32.xlu0 %v1526_v53, %s2862_s30 }
0x1094   :  { %v2412_v16 = vpop.f32.mrb[20].mxu0 }
0x1095   :  { %1567 = vrot.lane.b32.xlu1 %v2412_v16, %s2863_s6  ;;  %v1536_v58 = vpop.f32.mrb[21].mxu0 }
0x1096   :  { %1565 = vrot.lane.b32.xlu0 %v1536_v58, %s2863_s6 }
0x1098   :  { %v2415_v3 = vpop.f32.mrb[22].mxu0 }
0x1099   :  { %1575 = vrot.lane.b32.xlu1 %v2415_v3, %s2864_s7  ;;  %v1546_v14 = vpop.f32.mrb[23].mxu0  ;;  %v2095_v3 = vld [vmem:[%s3458_s4 + $0xe] ss:$0 sm:$0xff] }
0x109a   :  { %1573 = vrot.lane.b32.xlu0 %v1546_v14, %s2864_s7 }
0x1103   :  { %v1560_v15 = vpop.permute.xlu1 %1559 }
0x1104   :  { %v1558_v54 = vpop.permute.xlu0 %1557  ;;  %v1580_v23 = vsel %vm207_vm5, %v2406_v11, %v1560_v15 }
0x1105   :  { %v1579_v51 = vsel %vm207_vm5, %v1516_v12, %v1558_v54  ;;  %v2096_v54 = vld [vmem:[%s3458_s4 + $0xf] ss:$0 sm:$0xff] }
0x1107   :  { %v1568_v20 = vpop.permute.xlu1 %1567 }
0x1108   :  { %v1566_v22 = vpop.permute.xlu0 %1565  ;;  %v1582_v27 = vsel %vm629_vm8, %v1580_v23, %v1568_v20 }
0x1109   :  { %v1581_v24 = vsel %vm629_vm8, %v1579_v51, %v1566_v22 }
0x110b   :  { %v1576_v21 = vpop.permute.xlu1 %1575 }
0x110c   :  { %v1574_v25 = vpop.permute.xlu0 %1573  ;;  %v1584_v28 = vsel %vm632_vm9, %v1582_v27, %v1576_v21  ;;  %v2112_v27 = vld [vmem:[%s3457_s3 + $0x78] sm:$0xff] }
0x110d   :  { %v1583_v1 = vsel %vm632_vm9, %v1581_v24, %v1574_v25  ;;  %v2111_v25 = vld [vmem:[%s3457_s3 + $0x70] sm:$0xff] }
0x110e   :  { %2424 = vmatprep.mubr.msk.f32.mxu0 %vm33_vm0, %v1583_v1  ;;  %v2613_v1 = vpack.c.bf16 %v2112_v27, %v2111_v25 }
0x110f   :  { %2425 = vmatmul.mubr.msk.f32.vlgmr.msra.gmra.mrb[24].mxu0 %vm33_vm0, %v1584_v28  ;;  %v2102_v28 = vld [vmem:[%s3458_s4 + $0xa] ss:$0 sm:$0xff] }
0x1110   :  { %2596 = vmatpush3.bf16.msra.mxu0 %v2593_v17  ;;  %2614 = vmatprep.subr.bf16.mxu1 %v2613_v1 }
0x1111   :  { %2598 = vmatprep.subr.bf16.mxu0 %v2597_v19  ;;  %2616 = vmatpush3.bf16.msra.mxu1 %v2613_v1 }
0x1114   :  { %2600 = vmatpush3.bf16.msra.mxu0 %v2597_v19 }
0x11e2   :  { %v2426_v29 = vpop.f32.mrb[24].mxu0 }
0x11e3   :  { %v1688_v30 = vadd.f32 %v2426_v29, %v2090_v0  ;;  %v1682_v32 = vpop.f32.mrb[25].mxu0 }
0x11e4   :  { %v1683_v33 = vadd.f32 %v2090_v0, %v1682_v32 }
0x11e5   :  { %v3362_v36 = vadd.f32 %v1688_v30, %v3188_v37 }
0x11e6   :  { %v3365_v38 = vadd.f32 %v1683_v33, %v3191_v39 }
0x11e7   :  { %v1698_v26 = vsel %vm33_vm0, %v3362_v36, 0.0 }
0x11e8   :  { %1699 = vadd.xlane.f32.xlu1 %v1698_v26  ;;  %v1695_v45 = vsel %vm33_vm0, %v3365_v38, 0.0 }
0x11e9   :  { %1696 = vadd.xlane.f32.xlu0 %v1695_v45  ;;  %v2114_v45 = vld [vmem:[%s3458_s4 + $0xb] ss:$0 sm:$0xff] }
0x1275   :  { %v1700_v40 = vpop.xlane.xlu1 %1699 }
0x1276   :  { %v1702_v41 = vmul.f32 0.03125, %v1700_v40  ;;  %v1697_v48 = vpop.xlane.xlu0 %1696 }
0x1277   :  { %v1701_v47 = vmul.f32 0.03125, %v1697_v48 }
0x1278   :  { %v1704_v50 = vsub.f32 %v3362_v36, %v1702_v41 }
0x1279   :  { %v1703_v37 = vsub.f32 %v3365_v38, %v1701_v47 }
0x127a   :  { %v1706_v35 = vmul.f32 %v1704_v50, %v1704_v50  ;;  %v1720_v22 = vmul.f32 %v2095_v3, %v1704_v50 }
0x127b   :  { %v1705_v52 = vmul.f32 %v1703_v37, %v1703_v37  ;;  %v1719_v14 = vmul.f32 %v2095_v3, %v1703_v37 }
0x127c   :  { %v1710_v42 = vsel %vm33_vm0, %v1706_v35, 0.0 }
0x127d   :  { %v1707_v39 = vsel %vm33_vm0, %v1705_v52, 0.0 }
0x127e   :  { %1708 = vadd.xlane.f32.xlu0 %v1707_v39 }
0x1282   :  { %1711 = vadd.xlane.f32.xlu0 %v1710_v42 }
0x130b   :  { %v1709_v63 = vpop.xlane.xlu0 %1708 }
0x130c   :  { %v1713_v2 = vmul.f32 0.032258064, %v1709_v63 }
0x130e   :  { %2816 = vrsqrt.f32 %v1713_v2  ;;  %vm1723_vm3 = vcmp.eq.f32.partialorder %v1713_v2, inf  ;;  %v1726_v8 = vand.u32 2147483648, %v1713_v2  ;;  %vm1725_vm4 = vcmp.eq.f32.partialorder %v1713_v2, 0.0 }
0x130f   :  { %v1712_v4 = vpop.xlane.xlu0 %1711 }
0x1310   :  { %v1714_v5 = vmul.f32 0.032258064, %v1712_v4 }
0x1312   :  { %2818 = vrsqrt.f32 %v1714_v5  ;;  %vm1730_vm5 = vcmp.eq.f32.partialorder %v1714_v5, inf  ;;  %v1733_v13 = vand.u32 2147483648, %v1714_v5  ;;  %vm1732_vm6 = vcmp.eq.f32.partialorder %v1714_v5, 0.0 }
0x1318   :  { %v2817_v6 = vpop.eup %2816 }
0x1319   :  { %v1722_v7 = vmul.f32 %v2817_v6, %v1713_v2 }
0x131b   :  { %v1724_v9 = vsel %vm1723_vm3, %v1713_v2, %v1722_v7 }
0x131c   :  { %v2819_v62 = vpop.eup %2818  ;;  %v1727_v10 = vsel %vm1725_vm4, %v1726_v8, %v1724_v9  ;;  %v2119_v9 = vld [vmem:[%s3458_s4 + $0x10] ss:$0 sm:$0xff] }
0x131d   :  { %v1729_v11 = vmul.f32 %v2819_v62, %v1714_v5  ;;  %v1735_v12 = vadd.f32 1e-06, %v1727_v10 }
0x131f   :  { %v1731_v53 = vsel %vm1730_vm5, %v1714_v5, %v1729_v11  ;;  %2820 = vrcp.f32 %v1735_v12  ;;  %v2120_v12 = vld [vmem:[%s3458_s4 + $0x11] ss:$0 sm:$0xff] }
0x1320   :  { %v1734_v16 = vsel %vm1732_vm6, %v1733_v13, %v1731_v53 }
0x1321   :  { %v1736_v58 = vadd.f32 1e-06, %v1734_v16 }
0x1323   :  { %2822 = vrcp.f32 %v1736_v58 }
0x1329   :  { %v2821_v15 = vpop.eup %2820 }
0x132a   :  { %v1738_v20 = vmul.f32 %v2821_v15, %v1719_v14 }
0x132c   :  { %v1745_v51 = vadd.f32 %v2096_v54, %v1738_v20 }
0x132d   :  { %v2823_v21 = vpop.eup %2822 }
0x132e   :  { %v1740_v23 = vmul.f32 %v2823_v21, %v1720_v22  ;;  %2435 = vmatprep.mubr.msk.f32.mxu0 %vm33_vm0, %v1745_v51 }
0x1330   :  { %v1746_v24 = vadd.f32 %v2096_v54, %v1740_v23 }
0x1332   :  { %2436 = vmatmul.mubr.msk.f32.vlgmr.msra.gmra.mrb[26].mxu0 %vm33_vm0, %v1746_v24 }
0x1405   :  { %v2437_v0 = vpop.f32.mrb[26].mxu0 }
0x1406   :  { %v1834_v29 = vadd.f32 %v2437_v0, %v2102_v28  ;;  %v1828_v30 = vpop.f32.mrb[27].mxu0 }
0x1407   :  { %v1829_v32 = vadd.f32 %v2102_v28, %v1828_v30 }
0x1408   :  { %v1838_v26 = vmax.f32 %v1834_v29, 0.0 }
0x1409   :  { %v1837_v33 = vmax.f32 %v1829_v32, 0.0 }
0x140b   :  { %2454 = vmatprep.mubr.msk.f32.mxu1 %vm361_vm7, %v1837_v33 }
0x140c   :  { %2455 = vmatmul.mubr.msk.f32.vlgmr.msra.gmra.mrb[18].mxu1 %vm361_vm7, %v1838_v26 }
0x14df   :  { %v2456_v40 = vpop.f32.mrb[18].mxu1 }
0x14e0   :  { %v1931_v41 = vadd.f32 %v2456_v40, %v2114_v45  ;;  %v1925_v48 = vpop.f32.mrb[19].mxu1 }
0x14e1   :  { %v1926_v47 = vadd.f32 %v2114_v45, %v1925_v48 }
0x14e2   :  { %v1935_v50 = vadd.f32 %v1931_v41, %v3362_v36 }
0x14e3   :  { %v1934_v37 = vadd.f32 %v1926_v47, %v3365_v38 }
0x14e4   :  { %v1942_v52 = vsel %vm33_vm0, %v1935_v50, 0.0 }
0x14e5   :  { %1943 = vadd.xlane.f32.xlu1 %v1942_v52  ;;  %v1939_v39 = vsel %vm33_vm0, %v1934_v37, 0.0 }
0x14e6   :  { %1940 = vadd.xlane.f32.xlu0 %v1939_v39 }
0x1572   :  { %v1944_v35 = vpop.xlane.xlu1 %1943 }
0x1573   :  { %v1946_v42 = vmul.f32 0.03125, %v1944_v35  ;;  %v1941_v43 = vpop.xlane.xlu0 %1940 }
0x1574   :  { %v1945_v46 = vmul.f32 0.03125, %v1941_v43 }
0x1575   :  { %v1948_v57 = vsub.f32 %v1935_v50, %v1946_v42 }
0x1576   :  { %v1947_v17 = vsub.f32 %v1934_v37, %v1945_v46 }
0x1577   :  { %v1950_v44 = vmul.f32 %v1948_v57, %v1948_v57  ;;  %v1964_v62 = vmul.f32 %v2119_v9, %v1948_v57 }
0x1578   :  { %v1949_v19 = vmul.f32 %v1947_v17, %v1947_v17  ;;  %v1963_v11 = vmul.f32 %v2119_v9, %v1947_v17 }
0x1579   :  { %v1954_v49 = vsel %vm33_vm0, %v1950_v44, 0.0 }
0x157a   :  { %1955 = vadd.xlane.f32.xlu1 %v1954_v49  ;;  %v1951_v36 = vsel %vm33_vm0, %v1949_v19, 0.0 }
0x157b   :  { %1952 = vadd.xlane.f32.xlu0 %v1951_v36 }
0x1607   :  { %v1956_v38 = vpop.xlane.xlu1 %1955 }
0x1608   :  { %v1958_v55 = vmul.f32 0.032258064, %v1956_v38  ;;  %v1953_v34 = vpop.xlane.xlu0 %1952 }
0x1609   :  { %v1957_v18 = vmul.f32 0.032258064, %v1953_v34 }
0x160a   :  { %2824 = vrsqrt.f32 %v1958_v55  ;;  %vm1974_vm7 = vcmp.eq.f32.partialorder %v1958_v55, inf  ;;  %v1977_v60 = vand.u32 2147483648, %v1958_v55  ;;  %vm1976_vm8 = vcmp.eq.f32.partialorder %v1958_v55, 0.0 }
0x160b   :  { %2826 = vrsqrt.f32 %v1957_v18  ;;  %vm1967_vm9 = vcmp.eq.f32.partialorder %v1957_v18, inf  ;;  %v1970_v2 = vand.u32 2147483648, %v1957_v18  ;;  %vm1969_vm10 = vcmp.eq.f32.partialorder %v1957_v18, 0.0 }
0x1614   :  { %v2825_v56 = vpop.eup %2824 }
0x1615   :  { %v2827_v31 = vpop.eup %2826  ;;  %v1973_v59 = vmul.f32 %v2825_v56, %v1958_v55 }
0x1616   :  { %v1966_v61 = vmul.f32 %v2827_v31, %v1957_v18 }
0x1617   :  { %v1975_v63 = vsel %vm1974_vm7, %v1958_v55, %v1973_v59 }
0x1618   :  { %v1978_v4 = vsel %vm1976_vm8, %v1977_v60, %v1975_v63  ;;  %v1968_v5 = vsel %vm1967_vm9, %v1957_v18, %v1966_v61 }
0x1619   :  { %v1980_v6 = vadd.f32 1e-06, %v1978_v4  ;;  %v1971_v7 = vsel %vm1969_vm10, %v1970_v2, %v1968_v5 }
0x161a   :  { %v1979_v8 = vadd.f32 1e-06, %v1971_v7 }
0x161b   :  { %2828 = vrcp.f32 %v1980_v6 }
0x161c   :  { %2830 = vrcp.f32 %v1979_v8 }
0x1625   :  { %v2829_v10 = vpop.eup %2828 }
0x1626   :  { %v2831_v13 = vpop.eup %2830  ;;  %v1984_v53 = vmul.f32 %v2829_v10, %v1964_v62 }
0x1627   :  { %v1982_v16 = vmul.f32 %v2831_v13, %v1963_v11 }
0x1628   :  { %v1990_v58 = vadd.f32 %v2120_v12, %v1984_v53 }
0x1629   :  { %v1989_v3 = vadd.f32 %v2120_v12, %v1982_v16 }
0x162a   :  { %1992 = vst.msk [vmem:[#allocation2 + $0x8] sm:$0xff] %vm33_vm0, %v1990_v58 }
0x162b   :  { %1991 = vst.msk [vmem:[#allocation2] sm:$0xff] %vm33_vm0, %v1989_v3 }
0x162c   :  { %2843 = shalt.err (!%p2840_p4)
}
0x162d   :  { %s2844_s8 = scalar_lea.hbm %s3459_s5, 256 }
0x162e   :  { %p2845_p5 = scmp.ne.s32.totalorder %s3459_s5, %s2844_s8  ;;  %p2848_p6 = scmp.lt.u32.totalorder %s2844_s8, %s3459_s5 }
0x1630   :  { %p2850_p7 = pnand %p2848_p6, %p2845_p5 }
0x1632   :  { %2853 = shalt.err (!%p2850_p7)
}
0x1633   :  { %s2866_s16 = smov 128  }
0x1634   :  { %2004 = dma.vmem_to_hbm [thread:$0]  %s1999_s26, 256, %s3459_s5, [#allocation3], %s2866_s16, %s2866_s16, %s2862_s30  }
0x1635   :  { %2854 = dma.done.wait [#allocation3], 256  }
0x1636   :  { %2855 = vsyncadd [#allocation3], 4294967040 }
0x1637   :  { %2008 = vsyncpa [#allocation3], 1 }

</bundles_post_ra>
